<compile_context>
chip_gen: v6e
topology: v6e:2x2x1
jax: 0.10.0
libtpu: 0.0.40
codegen_flags: <defaults>
</compile_context>

<pallas_src>
import math

import jax
import jax.numpy as jnp
from jax.experimental import pallas as pl
from jax.experimental.pallas import tpu as pltpu


# -----------------------------------------------------------------------------
# Positional-encoding buffer (deterministic, matches the PyTorch register_buffer)
# -----------------------------------------------------------------------------
def make_position_encoding(embedding_dim: int, max_len: int = 500, dtype=jnp.float32):
    position = jnp.arange(max_len, dtype=jnp.float32)[:, None]                 # (max_len, 1)
    div_term = jnp.exp(
        jnp.arange(0, embedding_dim, 2, dtype=jnp.float32)
        * (-math.log(10000.0) / embedding_dim)
    )
    angles = position * div_term                                               # (max_len, ceil(E/2))
    pe = jnp.zeros((max_len, embedding_dim), dtype=jnp.float32)
    pe = pe.at[:, 0::2].set(jnp.sin(angles))
    pe = pe.at[:, 1::2].set(jnp.cos(angles)[:, : embedding_dim // 2])          # odd-E safe
    return pe[:, None, :].astype(dtype)                                        # (max_len, 1, E)


def _sigmoid(v):
    return 1.0 / (1.0 + jnp.exp(-v))


# -----------------------------------------------------------------------------
# Kernel 1: fused per-batch scaling + batched input projection (both directions)
#   x = emb * scale            (scale is per flattened (s,b) row)
#   gx[d] = x @ Wi[d]          Wi[d] = [Wir|Wiz|Win] of direction d, shape (E, 3H)
# -----------------------------------------------------------------------------
def _scale_proj_kernel(emb_ref, scale_ref, wi_ref, gx_ref):
    x = emb_ref[...].astype(jnp.float32) * scale_ref[...]
    gx_ref[0] = jnp.dot(x, wi_ref[0],
                        preferred_element_type=jnp.float32).astype(gx_ref.dtype)
    gx_ref[1] = jnp.dot(x, wi_ref[1],
                        preferred_element_type=jnp.float32).astype(gx_ref.dtype)


def _choose_row_tile(n_rows, emb_dim, g3, itemsize, budget_bytes=8 * 1024 * 1024):
    # Double-buffered (emb + scale + 2*gx) tiles under a conservative VMEM budget
    # (also safe for v7x's 64 MiB total VMEM / 32 MiB scoped default).
    per_row = (emb_dim + 1 + 2 * g3) * itemsize
    t = budget_bytes // (2 * max(per_row, 1))
    t = min(t, n_rows, 4096)
    if t >= n_rows:
        return n_rows
    return max(8, t - (t % 8))


def scale_input_proj(emb_flat, scale_flat, wi):
    """emb_flat: (S*B, E); scale_flat: (S*B, 1); wi: (2, E, 3H) -> gx: (2, S*B, 3H)."""
    n, e = emb_flat.shape
    g3 = wi.shape[2]
    tn = _choose_row_tile(n, e, g3, emb_flat.dtype.itemsize)
    return pl.pallas_call(
        _scale_proj_kernel,
        out_shape=jax.ShapeDtypeStruct((2, n, g3), jnp.float32),
        grid=(pl.cdiv(n, tn),),
        in_specs=[
            pl.BlockSpec((tn, e), lambda i: (i, 0)),
            pl.BlockSpec((tn, 1), lambda i: (i, 0)),
            pl.BlockSpec((2, e, g3), lambda i: (0, 0, 0)),   # weights stay resident
        ],
        out_specs=pl.BlockSpec((2, tn, g3), lambda i: (0, i, 0)),
        compiler_params=pltpu.CompilerParams(
            dimension_semantics=("parallel",)),
    )(emb_flat, scale_flat, wi)


# -----------------------------------------------------------------------------
# Kernel 2: bidirectional GRU recurrence.
#   grid = (direction, time_tile); direction is "parallel" (two TCs on v7x),
#   time is "arbitrary" (sequential).  Per timestep only ONE fused MXU dot
#   (h @ Wh, Wh = (H, 3H)) remains; everything else is VPU/EUP elementwise.
# -----------------------------------------------------------------------------
def _bigru_kernel(gx_ref, pep_ref, wh_ref, bhn_ref, out_ref, h_ref):
    # gx:  (TT, B, 3H)  hoisted input projections (x*s) @ [Wir|Wiz|Win]
    # pep: (TT, 1, 3H)  pe @ [Wir|Wiz|Win] + fused input-side biases
    # wh:  (H, 3H)      fused hidden->gates weights for this direction
    # bhn: (1, H)       hidden bias of the candidate gate (stays inside r*(...))
    # out: (TT, B, H)   per-timestep hidden states
    # h:   (B, H) f32   carry across time tiles (VMEM scratch)
    d = pl.program_id(0)            # 0 = forward, 1 = backward
    t = pl.program_id(1)

    @pl.when(t == 0)
    def _():
        h_ref[...] = jnp.zeros_like(h_ref)

    tt, _, hd = out_ref.shape
    wh = wh_ref[...]
    bhn = bhn_ref[...].astype(jnp.float32)

    def step(i, h):
        # backward direction walks the tile in reverse
        local = (1 - d) * i + d * (tt - 1 - i)
        gx = gx_ref[local].astype(jnp.float32) + pep_ref[local].astype(jnp.float32)
        gh = jnp.dot(h, wh, preferred_element_type=jnp.float32)        # (B, 3H)
        s = gx + gh
        r = _sigmoid(s[:, :hd])
        z = _sigmoid(s[:, hd:2 * hd])
        n = jnp.tanh(gx[:, 2 * hd:] + r * (gh[:, 2 * hd:] + bhn))
        h_new = (1.0 - z) * n + z * h
        out_ref[local] = h_new.astype(out_ref.dtype)
        return h_new

    h_ref[...] = jax.lax.fori_loop(0, tt, step, h_ref[...], unroll=True)


def _choose_time_tile(S, B, g3, hd, itemsize, budget_bytes=4 * 1024 * 1024, max_tt=32):
    # TT must divide S (no ragged recurrence tiles).  TODO(synk): for prime S this
    # degenerates to TT=1 (still correct, just per-step grid overhead again).
    per_step = (B * g3 + g3 + B * hd) * itemsize
    cap = max(1, budget_bytes // (2 * max(per_step, 1)))
    cap = min(cap, max_tt, S)
    tt = 1
    for c in range(1, cap + 1):
        if S % c == 0:
            tt = c
    return tt


def bigru(gx, pep, wh, bhn):
    """gx: (2, S, B, 3H); pep: (2, S, 1, 3H); wh: (2, H, 3H); bhn: (2, 1, H).
    Returns out: (2, S, B, H) with out[0] = forward states, out[1] = backward states.
    """
    _, S, B, g3 = gx.shape
    hd = wh.shape[1]
    tt = _choose_time_tile(S, B, g3, hd, gx.dtype.itemsize)
    nt = S // tt

    def tmap(d, t):
        # forward consumes time tiles 0..nt-1, backward consumes nt-1..0
        return (d, (1 - d) * t + d * (nt - 1 - t), 0, 0)

    return pl.pallas_call(
        _bigru_kernel,
        out_shape=jax.ShapeDtypeStruct((2, S, B, hd), jnp.float32),
        grid=(2, nt),
        in_specs=[
            pl.BlockSpec((None, tt, B, g3), tmap),
            pl.BlockSpec((None, tt, 1, g3), tmap),
            pl.BlockSpec((None, hd, g3), lambda d, t: (d, 0, 0)),   # resident per dir
            pl.BlockSpec((None, 1, hd), lambda d, t: (d, 0, 0)),
        ],
        out_specs=pl.BlockSpec((None, tt, B, hd), tmap),
        scratch_shapes=[pltpu.VMEM((B, hd), jnp.float32)],
        compiler_params=pltpu.CompilerParams(
            dimension_semantics=("parallel", "arbitrary")),
    )(gx, pep, wh, bhn)


# -----------------------------------------------------------------------------
# Full encoder forward
# -----------------------------------------------------------------------------
def _make_scale(params, B):
    b_idx = jnp.arange(B)
    s = jnp.where(b_idx == 0, params["chinese_weight"], params["phoneme_weight"])
    return s.astype(jnp.float32).reshape(1, B, 1)


@jax.jit
def encoder_forward(src, p):
    # TODO(synk): embedding gather stays in XLA (data-dependent row gather); a
    # Pallas pl.Element gather is possible but not worthwhile at these sizes.
    emb = jnp.take(p["embedding"], src, axis=0)                     # (S, B, E)
    S, B, E = emb.shape
    hd = p["wh"].shape[1]
    g3 = 3 * hd

    scale_b = jnp.where(jnp.arange(B) == 0,
                        p["chinese_weight"], p["phoneme_weight"]).astype(jnp.float32)
    scale_flat = jnp.tile(scale_b, (S,))[:, None]                   # (S*B, 1)

    # Kernel 1: fused scaling + hoisted input projections (both directions).
    gx_flat = scale_input_proj(emb.reshape(S * B, E), scale_flat, p["wi"])  # (2, S*B, 3H)
    gx = gx_flat.reshape(2, S, B, g3)

    # pe @ Wi + fused input-side biases -- tiny (2, S, 3H) matmul, left in XLA.
    pe2d = p["pe"][:S, 0, :].astype(jnp.float32)                    # (S, E)
    pep = (jnp.einsum("se,def->dsf", pe2d, p["wi"],
                      precision=jax.lax.Precision.HIGHEST)
           + p["bi"][:, None, :])[:, :, None, :]                    # (2, S, 1, 3H)

    # Kernel 2: bidirectional GRU recurrence.
    out4 = bigru(gx, pep, p["wh"], p["bhn"])                        # (2, S, B, H)

    outputs = jnp.concatenate([out4[0], out4[1]], axis=-1)          # (S, B, 2H)
    # final hidden states = fwd output at t=S-1, bwd output at t=0
    h_cat = jnp.concatenate([out4[0, -1], out4[1, 0]], axis=-1)     # (B, 2H)
    hidden = jnp.tanh(
        jnp.dot(h_cat, p["fc_w"], precision=jax.lax.Precision.HIGHEST) + p["fc_b"][0])
    return outputs, hidden


# -----------------------------------------------------------------------------
# Parameter packing: raw per-gate GRU params -> fused kernel-ready params
# -----------------------------------------------------------------------------
def pack_encoder_params(raw):
    def pack_dir(g):
        wi = jnp.concatenate([g["wir"], g["wiz"], g["win"]], axis=1)         # (E, 3H)
        wh = jnp.concatenate([g["whr"], g["whz"], g["whn"]], axis=1)         # (H, 3H)
        # bir+bhr and biz+bhz fold into the input-side bias; bin stays; bhn must
        # remain inside the r*(...) term, so it is kept separate.
        bi = jnp.concatenate([g["bir"] + g["bhr"],
                              g["biz"] + g["bhz"],
                              g["bin"]], axis=1)[0]                          # (3H,)
        return wi, wh, bi, g["bhn"]                                          # bhn (1, H)

    wi_f, wh_f, bi_f, bhn_f = pack_dir(raw["gru_fwd"])
    wi_b, wh_b, bi_b, bhn_b = pack_dir(raw["gru_bwd"])
    return {
        "embedding": raw["embedding"],
        "pe": raw["pe"],
        "chinese_weight": raw["chinese_weight"],
        "phoneme_weight": raw["phoneme_weight"],
        "wi": jnp.stack([wi_f, wi_b]),        # (2, E, 3H)
        "wh": jnp.stack([wh_f, wh_b]),        # (2, H, 3H)
        "bi": jnp.stack([bi_f, bi_b]),        # (2, 3H)
        "bhn": jnp.stack([bhn_f, bhn_b]),     # (2, 1, H)
        "fc_w": raw["fc_w"],
        "fc_b": raw["fc_b"],
    }


# -----------------------------------------------------------------------------
# Pure-JAX reference (for correctness check) -- uses the raw per-gate params
# -----------------------------------------------------------------------------
def _dot_hi(a, b):
    return jnp.dot(a, b, precision=jax.lax.Precision.HIGHEST)


def encoder_reference(src, params):
    emb = jnp.take(params["embedding"], src, axis=0)
    S, B, _ = emb.shape
    x = emb * _make_scale(params, B) + params["pe"][:S]

    def gru_scan(p, xs, reverse):
        H = p["whr"].shape[0]
        h0 = jnp.zeros((xs.shape[1], H), jnp.float32)

        def step(h, x_t):
            r = _sigmoid(_dot_hi(x_t, p["wir"]) + p["bir"][0]
                         + _dot_hi(h, p["whr"]) + p["bhr"][0])
            z = _sigmoid(_dot_hi(x_t, p["wiz"]) + p["biz"][0]
                         + _dot_hi(h, p["whz"]) + p["bhz"][0])
            n = jnp.tanh(_dot_hi(x_t, p["win"]) + p["bin"][0]
                         + r * (_dot_hi(h, p["whn"]) + p["bhn"][0]))
            h_new = (1.0 - z) * n + z * h
            return h_new, h_new

        h_fin, ys = jax.lax.scan(step, h0, xs, reverse=reverse)
        return ys, h_fin

    out_f, h_f = gru_scan(params["gru_fwd"], x, False)
    out_b, h_b = gru_scan(params["gru_bwd"], x, True)
    outputs = jnp.concatenate([out_f, out_b], axis=-1)
    h_cat = jnp.concatenate([h_f, h_b], axis=-1)
    hidden = jnp.tanh(_dot_hi(h_cat, params["fc_w"]) + params["fc_b"][0])
    return outputs, hidden


# -----------------------------------------------------------------------------
# Deterministic parameter construction
# -----------------------------------------------------------------------------
def init_params(key, input_dim, emb_dim, enc_hid, dec_hid, max_len=500):
    k_emb, k_fwd, k_bwd, k_fc = jax.random.split(key, 4)

    def normal(k, shape, scale):
        return jax.random.normal(k, shape, dtype=jnp.float32) * scale

    def gru_params(kbase):
        ks = jax.random.split(kbase, 12)
        s = 1.0 / math.sqrt(enc_hid)
        names = ["wir", "wiz", "win", "whr", "whz", "whn",
                 "bir", "biz", "bin", "bhr", "bhz", "bhn"]
        shapes = ([(emb_dim, enc_hid)] * 3 + [(enc_hid, enc_hid)] * 3
                  + [(1, enc_hid)] * 6)
        return {n: normal(kk, sh, s) for n, kk, sh in zip(names, ks, shapes)}

    kf_w, kf_b = jax.random.split(k_fc)
    s_fc = 1.0 / math.sqrt(2 * enc_hid)
    return {
        "embedding": normal(k_emb, (input_dim, emb_dim), 1.0),
        "pe": make_position_encoding(emb_dim, max_len=max_len, dtype=jnp.float32),
        "chinese_weight": jnp.float32(1.25),
        "phoneme_weight": jnp.float32(0.8),
        "gru_fwd": gru_params(k_fwd),
        "gru_bwd": gru_params(k_bwd),
        "fc_w": normal(kf_w, (2 * enc_hid, dec_hid), s_fc),
        "fc_b": normal(kf_b, (1, dec_hid), s_fc),
    }


if __name__ == "__main__":
    INPUT_DIM = 16     # vocab size
    EMB_DIM = 32
    ENC_HID = 32
    DEC_HID = 32
    S, B = 8, 2
    MAX_LEN = 500

    key = jax.random.PRNGKey(0)
    k_src, k_par = jax.random.split(key)
    src = jax.random.randint(k_src, (S, B), 0, INPUT_DIM, dtype=jnp.int32)
    raw_params = init_params(k_par, INPUT_DIM, EMB_DIM, ENC_HID, DEC_HID, MAX_LEN)
    packed_params = pack_encoder_params(raw_params)

    outputs, hidden = encoder_forward(src, packed_params)
    outputs = jax.block_until_ready(outputs)
    hidden = jax.block_until_ready(hidden)

    ref_out, ref_hid = encoder_reference(src, raw_params)

    assert outputs.shape == (S, B, 2 * ENC_HID)
    assert hidden.shape == (B, DEC_HID)
    assert jnp.allclose(outputs, ref_out, atol=1e-3, rtol=1e-3), "outputs mismatch vs reference"
    assert jnp.allclose(hidden, ref_hid, atol=1e-3, rtol=1e-3), "hidden mismatch vs reference"

    print("KERNEL_OK")
</pallas_src>

<mosaic_0001>
module attributes {stable_mosaic.version = 11 : i64} {
  func.func @_scale_proj_kernel(%arg0: i32, %arg1: memref<16x32xf32, #tpu.memory_space<vmem>>, %arg2: memref<16x1xf32, #tpu.memory_space<vmem>>, %arg3: memref<2x32x96xf32, #tpu.memory_space<vmem>>, %arg4: memref<2x16x96xf32, #tpu.memory_space<vmem>>) attributes {dimension_semantics = [#tpu.dimension_semantics<parallel>], iteration_bounds = array<i64: 1>, scalar_prefetch = 0 : i64, scratch_operands = 0 : i64, tpu.core_type = #tpu.core_type<tc>, window_params = [{transform_indices = @transform_0, window_bounds = array<i64: 16, 32>}, {transform_indices = @transform_1, window_bounds = array<i64: 16, 1>}, {pipeline_mode = #tpu.pipeline_mode<synchronous>, transform_indices = @transform_2, window_bounds = array<i64: 2, 32, 96>}, {transform_indices = @transform_3, window_bounds = array<i64: 2, 16, 96>}]} {
    %c0 = arith.constant 0 : index
    %c0_0 = arith.constant 0 : index
    %0 = vector.load %arg1[%c0, %c0_0] : memref<16x32xf32, #tpu.memory_space<vmem>>, vector<16x32xf32>
    %c0_1 = arith.constant 0 : index
    %c0_2 = arith.constant 0 : index
    %1 = vector.load %arg2[%c0_1, %c0_2] : memref<16x1xf32, #tpu.memory_space<vmem>>, vector<16x1xf32>
    %2 = vector.broadcast %1 : vector<16x1xf32> to vector<16x32xf32>
    %3 = arith.mulf %0, %2 : vector<16x32xf32>
    %c0_3 = arith.constant 0 : index
    %c0_4 = arith.constant 0 : index
    %c0_5 = arith.constant 0 : index
    %4 = vector.load %arg3[%c0_3, %c0_4, %c0_5] : memref<2x32x96xf32, #tpu.memory_space<vmem>>, vector<1x32x96xf32>
    %5 = vector.shape_cast %4 : vector<1x32x96xf32> to vector<32x96xf32>
    %cst = arith.constant dense<0.000000e+00> : vector<16x96xf32>
    %6 = tpu.matmul %3, %5, %cst {dimension_numbers = #tpu.dot_dimension_numbers<[1], [0], [0], [1], [0, 0, 1, 1], [], []>} : vector<16x32xf32>, vector<32x96xf32>, vector<16x96xf32> -> vector<16x96xf32>
    %c0_6 = arith.constant 0 : index
    %c0_7 = arith.constant 0 : index
    %c0_8 = arith.constant 0 : index
    %7 = vector.load %arg4[%c0_6, %c0_7, %c0_8] : memref<2x16x96xf32, #tpu.memory_space<vmem>>, vector<1x16x96xf32>
    %8 = vector.shape_cast %7 : vector<1x16x96xf32> to vector<16x96xf32>
    %9 = vector.shape_cast %6 : vector<16x96xf32> to vector<1x16x96xf32>
    tpu.vector_store %arg4[%c0_6, %c0_7, %c0_8], %9 {strides = array<i32>} : memref<2x16x96xf32, #tpu.memory_space<vmem>>, vector<1x16x96xf32>,
    %c1 = arith.constant 1 : index
    %c0_9 = arith.constant 0 : index
    %c0_10 = arith.constant 0 : index
    %10 = vector.load %arg3[%c1, %c0_9, %c0_10] : memref<2x32x96xf32, #tpu.memory_space<vmem>>, vector<1x32x96xf32>
    %11 = vector.shape_cast %10 : vector<1x32x96xf32> to vector<32x96xf32>
    %cst_11 = arith.constant dense<0.000000e+00> : vector<16x96xf32>
    %12 = tpu.matmul %3, %11, %cst_11 {dimension_numbers = #tpu.dot_dimension_numbers<[1], [0], [0], [1], [0, 0, 1, 1], [], []>} : vector<16x32xf32>, vector<32x96xf32>, vector<16x96xf32> -> vector<16x96xf32>
    %c1_12 = arith.constant 1 : index
    %c0_13 = arith.constant 0 : index
    %c0_14 = arith.constant 0 : index
    %13 = vector.load %arg4[%c1_12, %c0_13, %c0_14] : memref<2x16x96xf32, #tpu.memory_space<vmem>>, vector<1x16x96xf32>
    %14 = vector.shape_cast %13 : vector<1x16x96xf32> to vector<16x96xf32>
    %15 = vector.shape_cast %12 : vector<16x96xf32> to vector<1x16x96xf32>
    tpu.vector_store %arg4[%c1_12, %c0_13, %c0_14], %15 {strides = array<i32>} : memref<2x16x96xf32, #tpu.memory_space<vmem>>, vector<1x16x96xf32>,
    return
  }
  func.func @transform_0(%arg0: i32) -> (i32, i32) {
    %c0_i32 = arith.constant 0 : i32
    %c0_i32_0 = arith.constant 0 : i32
    return %arg0, %c0_i32 : i32, i32
  }
  func.func @transform_1(%arg0: i32) -> (i32, i32) {
    %c0_i32 = arith.constant 0 : i32
    %c0_i32_0 = arith.constant 0 : i32
    return %arg0, %c0_i32 : i32, i32
  }
  func.func @transform_2(%arg0: i32) -> (i32, i32, i32) {
    %c0_i32 = arith.constant 0 : i32
    %c0_i32_0 = arith.constant 0 : i32
    %c0_i32_1 = arith.constant 0 : i32
    %c0_i32_2 = arith.constant 0 : i32
    return %c0_i32, %c0_i32_0, %c0_i32_1 : i32, i32, i32
  }
  func.func @transform_3(%arg0: i32) -> (i32, i32, i32) {
    %c0_i32 = arith.constant 0 : i32
    %c0_i32_0 = arith.constant 0 : i32
    %c0_i32_1 = arith.constant 0 : i32
    return %c0_i32, %arg0, %c0_i32_0 : i32, i32, i32
  }
}

module attributes {stable_mosaic.version = 11 : i64} {
  func.func @_bigru_kernel(%arg0: i32, %arg1: i32, %arg2: memref<1x8x2x96xf32, #tpu.memory_space<vmem>>, %arg3: memref<1x8x1x96xf32, #tpu.memory_space<vmem>>, %arg4: memref<1x32x96xf32, #tpu.memory_space<vmem>>, %arg5: memref<1x1x32xf32, #tpu.memory_space<vmem>>, %arg6: memref<1x8x2x32xf32, #tpu.memory_space<vmem>>, %arg7: memref<2x32xf32, #tpu.memory_space<vmem>>) attributes {dimension_semantics = [#tpu.dimension_semantics<parallel>, #tpu.dimension_semantics<arbitrary>], iteration_bounds = array<i64: 2, 1>, scalar_prefetch = 0 : i64, scratch_operands = 1 : i64, tpu.core_type = #tpu.core_type<tc>, window_params = [{transform_indices = @transform_0, window_bounds = array<i64: 1, 8, 2, 96>}, {transform_indices = @transform_1, window_bounds = array<i64: 1, 8, 1, 96>}, {transform_indices = @transform_2, window_bounds = array<i64: 1, 32, 96>}, {transform_indices = @transform_3, window_bounds = array<i64: 1, 1, 32>}, {transform_indices = @transform_4, window_bounds = array<i64: 1, 8, 2, 32>}]} {
    %c0_i32 = arith.constant 0 : i32
    %0 = arith.cmpi eq, %arg1, %c0_i32 : i32
    %1 = arith.extui %0 : i1 to i32
    %c0_i32_0 = arith.constant 0 : i32
    %2 = arith.cmpi ne, %1, %c0_i32_0 : i32
    scf.if %2 {
      %cst_162 = arith.constant 0.000000e+00 : f32
      %385 = vector.broadcast %cst_162 : f32 to vector<2x32xf32>
      %c0_163 = arith.constant 0 : index
      %c0_164 = arith.constant 0 : index
      %386 = vector.load %arg7[%c0_163, %c0_164] : memref<2x32xf32, #tpu.memory_space<vmem>>, vector<2x32xf32>
      tpu.vector_store %arg7[%c0_163, %c0_164], %385 {strides = array<i32>} : memref<2x32xf32, #tpu.memory_space<vmem>>, vector<2x32xf32>,
    } else {
    }
    %c0 = arith.constant 0 : index
    %c0_1 = arith.constant 0 : index
    %c0_2 = arith.constant 0 : index
    %3 = vector.load %arg4[%c0, %c0_1, %c0_2] : memref<1x32x96xf32, #tpu.memory_space<vmem>>, vector<1x32x96xf32>
    %4 = vector.shape_cast %3 : vector<1x32x96xf32> to vector<32x96xf32>
    %c0_3 = arith.constant 0 : index
    %c0_4 = arith.constant 0 : index
    %c0_5 = arith.constant 0 : index
    %5 = vector.load %arg5[%c0_3, %c0_4, %c0_5] : memref<1x1x32xf32, #tpu.memory_space<vmem>>, vector<1x1x32xf32>
    %6 = vector.shape_cast %5 : vector<1x1x32xf32> to vector<1x32xf32>
    %c0_6 = arith.constant 0 : index
    %c0_7 = arith.constant 0 : index
    %7 = vector.load %arg7[%c0_6, %c0_7] : memref<2x32xf32, #tpu.memory_space<vmem>>, vector<2x32xf32>
    %c0_i32_8 = arith.constant 0 : i32
    %c1_i32 = arith.constant 1 : i32
    %8 = arith.subi %c1_i32, %arg0 : i32
    %9 = arith.muli %8, %c0_i32_8 : i32
    %c7_i32 = arith.constant 7 : i32
    %10 = arith.subi %c7_i32, %c0_i32_8 : i32
    %11 = arith.muli %arg0, %10 : i32
    %12 = arith.addi %9, %11 : i32
    %c0_9 = arith.constant 0 : index
    %13 = arith.index_cast %12 : i32 to index
    %c0_10 = arith.constant 0 : index
    %c0_11 = arith.constant 0 : index
    %14 = vector.load %arg2[%c0_9, %13, %c0_10, %c0_11] : memref<1x8x2x96xf32, #tpu.memory_space<vmem>>, vector<1x1x2x96xf32>
    %15 = vector.shape_cast %14 : vector<1x1x2x96xf32> to vector<2x96xf32>
    %c0_12 = arith.constant 0 : index
    %16 = arith.index_cast %12 : i32 to index
    %c0_13 = arith.constant 0 : index
    %c0_14 = arith.constant 0 : index
    %17 = vector.load %arg3[%c0_12, %16, %c0_13, %c0_14] : memref<1x8x1x96xf32, #tpu.memory_space<vmem>>, vector<1x1x1x96xf32>
    %18 = vector.shape_cast %17 : vector<1x1x1x96xf32> to vector<1x96xf32>
    %19 = vector.broadcast %18 : vector<1x96xf32> to vector<2x96xf32>
    %20 = arith.addf %15, %19 : vector<2x96xf32>
    %cst = arith.constant dense<0.000000e+00> : vector<2x96xf32>
    %21 = tpu.matmul %7, %4, %cst {dimension_numbers = #tpu.dot_dimension_numbers<[1], [0], [0], [1], [0, 0, 1, 1], [], []>} : vector<2x32xf32>, vector<32x96xf32>, vector<2x96xf32> -> vector<2x96xf32>
    %22 = arith.addf %20, %21 : vector<2x96xf32>
    %23 = vector.extract_strided_slice %22 {offsets = [0, 0], sizes = [2, 32], strides = [1, 1]} : vector<2x96xf32> to vector<2x32xf32>
    %cst_15 = arith.constant 0.000000e+00 : f32
    %24 = vector.broadcast %cst_15 : f32 to vector<2x32xf32>
    %25 = arith.subf %24, %23 : vector<2x32xf32>
    %26 = math.exp %25 : vector<2x32xf32>
    %cst_16 = arith.constant 1.000000e+00 : f32
    %27 = vector.broadcast %cst_16 : f32 to vector<2x32xf32>
    %28 = arith.addf %27, %26 : vector<2x32xf32>
    %cst_17 = arith.constant 1.000000e+00 : f32
    %29 = vector.broadcast %cst_17 : f32 to vector<2x32xf32>
    %30 = arith.divf %29, %28 : vector<2x32xf32>
    %31 = vector.extract_strided_slice %22 {offsets = [0, 32], sizes = [2, 32], strides = [1, 1]} : vector<2x96xf32> to vector<2x32xf32>
    %cst_18 = arith.constant 0.000000e+00 : f32
    %32 = vector.broadcast %cst_18 : f32 to vector<2x32xf32>
    %33 = arith.subf %32, %31 : vector<2x32xf32>
    %34 = math.exp %33 : vector<2x32xf32>
    %cst_19 = arith.constant 1.000000e+00 : f32
    %35 = vector.broadcast %cst_19 : f32 to vector<2x32xf32>
    %36 = arith.addf %35, %34 : vector<2x32xf32>
    %cst_20 = arith.constant 1.000000e+00 : f32
    %37 = vector.broadcast %cst_20 : f32 to vector<2x32xf32>
    %38 = arith.divf %37, %36 : vector<2x32xf32>
    %39 = vector.extract_strided_slice %20 {offsets = [0, 64], sizes = [2, 32], strides = [1, 1]} : vector<2x96xf32> to vector<2x32xf32>
    %40 = vector.extract_strided_slice %21 {offsets = [0, 64], sizes = [2, 32], strides = [1, 1]} : vector<2x96xf32> to vector<2x32xf32>
    %41 = vector.broadcast %6 : vector<1x32xf32> to vector<2x32xf32>
    %42 = arith.addf %40, %41 : vector<2x32xf32>
    %43 = arith.mulf %30, %42 : vector<2x32xf32>
    %44 = arith.addf %39, %43 : vector<2x32xf32>
    %45 = math.tanh %44 : vector<2x32xf32>
    %cst_21 = arith.constant 1.000000e+00 : f32
    %46 = vector.broadcast %cst_21 : f32 to vector<2x32xf32>
    %47 = arith.subf %46, %38 : vector<2x32xf32>
    %48 = arith.mulf %47, %45 : vector<2x32xf32>
    %49 = arith.mulf %38, %7 : vector<2x32xf32>
    %50 = arith.addf %48, %49 : vector<2x32xf32>
    %c0_22 = arith.constant 0 : index
    %51 = arith.index_cast %12 : i32 to index
    %c0_23 = arith.constant 0 : index
    %c0_24 = arith.constant 0 : index
    %52 = vector.load %arg6[%c0_22, %51, %c0_23, %c0_24] : memref<1x8x2x32xf32, #tpu.memory_space<vmem>>, vector<1x1x2x32xf32>
    %53 = vector.shape_cast %52 : vector<1x1x2x32xf32> to vector<2x32xf32>
    %54 = vector.shape_cast %50 : vector<2x32xf32> to vector<1x1x2x32xf32>
    tpu.vector_store %arg6[%c0_22, %51, %c0_23, %c0_24], %54 {strides = array<i32>} : memref<1x8x2x32xf32, #tpu.memory_space<vmem>>, vector<1x1x2x32xf32>,
    %c1_i32_25 = arith.constant 1 : i32
    %c1_i32_26 = arith.constant 1 : i32
    %55 = arith.subi %c1_i32_26, %arg0 : i32
    %56 = arith.muli %55, %c1_i32_25 : i32
    %c7_i32_27 = arith.constant 7 : i32
    %57 = arith.subi %c7_i32_27, %c1_i32_25 : i32
    %58 = arith.muli %arg0, %57 : i32
    %59 = arith.addi %56, %58 : i32
    %c0_28 = arith.constant 0 : index
    %60 = arith.index_cast %59 : i32 to index
    %c0_29 = arith.constant 0 : index
    %c0_30 = arith.constant 0 : index
    %61 = vector.load %arg2[%c0_28, %60, %c0_29, %c0_30] : memref<1x8x2x96xf32, #tpu.memory_space<vmem>>, vector<1x1x2x96xf32>
    %62 = vector.shape_cast %61 : vector<1x1x2x96xf32> to vector<2x96xf32>
    %c0_31 = arith.constant 0 : index
    %63 = arith.index_cast %59 : i32 to index
    %c0_32 = arith.constant 0 : index
    %c0_33 = arith.constant 0 : index
    %64 = vector.load %arg3[%c0_31, %63, %c0_32, %c0_33] : memref<1x8x1x96xf32, #tpu.memory_space<vmem>>, vector<1x1x1x96xf32>
    %65 = vector.shape_cast %64 : vector<1x1x1x96xf32> to vector<1x96xf32>
    %66 = vector.broadcast %65 : vector<1x96xf32> to vector<2x96xf32>
    %67 = arith.addf %62, %66 : vector<2x96xf32>
    %cst_34 = arith.constant dense<0.000000e+00> : vector<2x96xf32>
    %68 = tpu.matmul %50, %4, %cst_34 {dimension_numbers = #tpu.dot_dimension_numbers<[1], [0], [0], [1], [0, 0, 1, 1], [], []>} : vector<2x32xf32>, vector<32x96xf32>, vector<2x96xf32> -> vector<2x96xf32>
    %69 = arith.addf %67, %68 : vector<2x96xf32>
    %70 = vector.extract_strided_slice %69 {offsets = [0, 0], sizes = [2, 32], strides = [1, 1]} : vector<2x96xf32> to vector<2x32xf32>
    %cst_35 = arith.constant 0.000000e+00 : f32
    %71 = vector.broadcast %cst_35 : f32 to vector<2x32xf32>
    %72 = arith.subf %71, %70 : vector<2x32xf32>
    %73 = math.exp %72 : vector<2x32xf32>
    %cst_36 = arith.constant 1.000000e+00 : f32
    %74 = vector.broadcast %cst_36 : f32 to vector<2x32xf32>
    %75 = arith.addf %74, %73 : vector<2x32xf32>
    %cst_37 = arith.constant 1.000000e+00 : f32
    %76 = vector.broadcast %cst_37 : f32 to vector<2x32xf32>
    %77 = arith.divf %76, %75 : vector<2x32xf32>
    %78 = vector.extract_strided_slice %69 {offsets = [0, 32], sizes = [2, 32], strides = [1, 1]} : vector<2x96xf32> to vector<2x32xf32>
    %cst_38 = arith.constant 0.000000e+00 : f32
    %79 = vector.broadcast %cst_38 : f32 to vector<2x32xf32>
    %80 = arith.subf %79, %78 : vector<2x32xf32>
    %81 = math.exp %80 : vector<2x32xf32>
    %cst_39 = arith.constant 1.000000e+00 : f32
    %82 = vector.broadcast %cst_39 : f32 to vector<2x32xf32>
    %83 = arith.addf %82, %81 : vector<2x32xf32>
    %cst_40 = arith.constant 1.000000e+00 : f32
    %84 = vector.broadcast %cst_40 : f32 to vector<2x32xf32>
    %85 = arith.divf %84, %83 : vector<2x32xf32>
    %86 = vector.extract_strided_slice %67 {offsets = [0, 64], sizes = [2, 32], strides = [1, 1]} : vector<2x96xf32> to vector<2x32xf32>
    %87 = vector.extract_strided_slice %68 {offsets = [0, 64], sizes = [2, 32], strides = [1, 1]} : vector<2x96xf32> to vector<2x32xf32>
    %88 = vector.broadcast %6 : vector<1x32xf32> to vector<2x32xf32>
    %89 = arith.addf %87, %88 : vector<2x32xf32>
    %90 = arith.mulf %77, %89 : vector<2x32xf32>
    %91 = arith.addf %86, %90 : vector<2x32xf32>
    %92 = math.tanh %91 : vector<2x32xf32>
    %cst_41 = arith.constant 1.000000e+00 : f32
    %93 = vector.broadcast %cst_41 : f32 to vector<2x32xf32>
    %94 = arith.subf %93, %85 : vector<2x32xf32>
    %95 = arith.mulf %94, %92 : vector<2x32xf32>
    %96 = arith.mulf %85, %50 : vector<2x32xf32>
    %97 = arith.addf %95, %96 : vector<2x32xf32>
    %c0_42 = arith.constant 0 : index
    %98 = arith.index_cast %59 : i32 to index
    %c0_43 = arith.constant 0 : index
    %c0_44 = arith.constant 0 : index
    %99 = vector.load %arg6[%c0_42, %98, %c0_43, %c0_44] : memref<1x8x2x32xf32, #tpu.memory_space<vmem>>, vector<1x1x2x32xf32>
    %100 = vector.shape_cast %99 : vector<1x1x2x32xf32> to vector<2x32xf32>
    %101 = vector.shape_cast %97 : vector<2x32xf32> to vector<1x1x2x32xf32>
    tpu.vector_store %arg6[%c0_42, %98, %c0_43, %c0_44], %101 {strides = array<i32>} : memref<1x8x2x32xf32, #tpu.memory_space<vmem>>, vector<1x1x2x32xf32>,
    %c2_i32 = arith.constant 2 : i32
    %c1_i32_45 = arith.constant 1 : i32
    %102 = arith.subi %c1_i32_45, %arg0 : i32
    %103 = arith.muli %102, %c2_i32 : i32
    %c7_i32_46 = arith.constant 7 : i32
    %104 = arith.subi %c7_i32_46, %c2_i32 : i32
    %105 = arith.muli %arg0, %104 : i32
    %106 = arith.addi %103, %105 : i32
    %c0_47 = arith.constant 0 : index
    %107 = arith.index_cast %106 : i32 to index
    %c0_48 = arith.constant 0 : index
    %c0_49 = arith.constant 0 : index
    %108 = vector.load %arg2[%c0_47, %107, %c0_48, %c0_49] : memref<1x8x2x96xf32, #tpu.memory_space<vmem>>, vector<1x1x2x96xf32>
    %109 = vector.shape_cast %108 : vector<1x1x2x96xf32> to vector<2x96xf32>
    %c0_50 = arith.constant 0 : index
    %110 = arith.index_cast %106 : i32 to index
    %c0_51 = arith.constant 0 : index
    %c0_52 = arith.constant 0 : index
    %111 = vector.load %arg3[%c0_50, %110, %c0_51, %c0_52] : memref<1x8x1x96xf32, #tpu.memory_space<vmem>>, vector<1x1x1x96xf32>
    %112 = vector.shape_cast %111 : vector<1x1x1x96xf32> to vector<1x96xf32>
    %113 = vector.broadcast %112 : vector<1x96xf32> to vector<2x96xf32>
    %114 = arith.addf %109, %113 : vector<2x96xf32>
    %cst_53 = arith.constant dense<0.000000e+00> : vector<2x96xf32>
    %115 = tpu.matmul %97, %4, %cst_53 {dimension_numbers = #tpu.dot_dimension_numbers<[1], [0], [0], [1], [0, 0, 1, 1], [], []>} : vector<2x32xf32>, vector<32x96xf32>, vector<2x96xf32> -> vector<2x96xf32>
    %116 = arith.addf %114, %115 : vector<2x96xf32>
    %117 = vector.extract_strided_slice %116 {offsets = [0, 0], sizes = [2, 32], strides = [1, 1]} : vector<2x96xf32> to vector<2x32xf32>
    %cst_54 = arith.constant 0.000000e+00 : f32
    %118 = vector.broadcast %cst_54 : f32 to vector<2x32xf32>
    %119 = arith.subf %118, %117 : vector<2x32xf32>
    %120 = math.exp %119 : vector<2x32xf32>
    %cst_55 = arith.constant 1.000000e+00 : f32
    %121 = vector.broadcast %cst_55 : f32 to vector<2x32xf32>
    %122 = arith.addf %121, %120 : vector<2x32xf32>
    %cst_56 = arith.constant 1.000000e+00 : f32
    %123 = vector.broadcast %cst_56 : f32 to vector<2x32xf32>
    %124 = arith.divf %123, %122 : vector<2x32xf32>
    %125 = vector.extract_strided_slice %116 {offsets = [0, 32], sizes = [2, 32], strides = [1, 1]} : vector<2x96xf32> to vector<2x32xf32>
    %cst_57 = arith.constant 0.000000e+00 : f32
    %126 = vector.broadcast %cst_57 : f32 to vector<2x32xf32>
    %127 = arith.subf %126, %125 : vector<2x32xf32>
    %128 = math.exp %127 : vector<2x32xf32>
    %cst_58 = arith.constant 1.000000e+00 : f32
    %129 = vector.broadcast %cst_58 : f32 to vector<2x32xf32>
    %130 = arith.addf %129, %128 : vector<2x32xf32>
    %cst_59 = arith.constant 1.000000e+00 : f32
    %131 = vector.broadcast %cst_59 : f32 to vector<2x32xf32>
    %132 = arith.divf %131, %130 : vector<2x32xf32>
    %133 = vector.extract_strided_slice %114 {offsets = [0, 64], sizes = [2, 32], strides = [1, 1]} : vector<2x96xf32> to vector<2x32xf32>
    %134 = vector.extract_strided_slice %115 {offsets = [0, 64], sizes = [2, 32], strides = [1, 1]} : vector<2x96xf32> to vector<2x32xf32>
    %135 = vector.broadcast %6 : vector<1x32xf32> to vector<2x32xf32>
    %136 = arith.addf %134, %135 : vector<2x32xf32>
    %137 = arith.mulf %124, %136 : vector<2x32xf32>
    %138 = arith.addf %133, %137 : vector<2x32xf32>
    %139 = math.tanh %138 : vector<2x32xf32>
    %cst_60 = arith.constant 1.000000e+00 : f32
    %140 = vector.broadcast %cst_60 : f32 to vector<2x32xf32>
    %141 = arith.subf %140, %132 : vector<2x32xf32>
    %142 = arith.mulf %141, %139 : vector<2x32xf32>
    %143 = arith.mulf %132, %97 : vector<2x32xf32>
    %144 = arith.addf %142, %143 : vector<2x32xf32>
    %c0_61 = arith.constant 0 : index
    %145 = arith.index_cast %106 : i32 to index
    %c0_62 = arith.constant 0 : index
    %c0_63 = arith.constant 0 : index
    %146 = vector.load %arg6[%c0_61, %145, %c0_62, %c0_63] : memref<1x8x2x32xf32, #tpu.memory_space<vmem>>, vector<1x1x2x32xf32>
    %147 = vector.shape_cast %146 : vector<1x1x2x32xf32> to vector<2x32xf32>
    %148 = vector.shape_cast %144 : vector<2x32xf32> to vector<1x1x2x32xf32>
    tpu.vector_store %arg6[%c0_61, %145, %c0_62, %c0_63], %148 {strides = array<i32>} : memref<1x8x2x32xf32, #tpu.memory_space<vmem>>, vector<1x1x2x32xf32>,
    %c3_i32 = arith.constant 3 : i32
    %c1_i32_64 = arith.constant 1 : i32
    %149 = arith.subi %c1_i32_64, %arg0 : i32
    %150 = arith.muli %149, %c3_i32 : i32
    %c7_i32_65 = arith.constant 7 : i32
    %151 = arith.subi %c7_i32_65, %c3_i32 : i32
    %152 = arith.muli %arg0, %151 : i32
    %153 = arith.addi %150, %152 : i32
    %c0_66 = arith.constant 0 : index
    %154 = arith.index_cast %153 : i32 to index
    %c0_67 = arith.constant 0 : index
    %c0_68 = arith.constant 0 : index
    %155 = vector.load %arg2[%c0_66, %154, %c0_67, %c0_68] : memref<1x8x2x96xf32, #tpu.memory_space<vmem>>, vector<1x1x2x96xf32>
    %156 = vector.shape_cast %155 : vector<1x1x2x96xf32> to vector<2x96xf32>
    %c0_69 = arith.constant 0 : index
    %157 = arith.index_cast %153 : i32 to index
    %c0_70 = arith.constant 0 : index
    %c0_71 = arith.constant 0 : index
    %158 = vector.load %arg3[%c0_69, %157, %c0_70, %c0_71] : memref<1x8x1x96xf32, #tpu.memory_space<vmem>>, vector<1x1x1x96xf32>
    %159 = vector.shape_cast %158 : vector<1x1x1x96xf32> to vector<1x96xf32>
    %160 = vector.broadcast %159 : vector<1x96xf32> to vector<2x96xf32>
    %161 = arith.addf %156, %160 : vector<2x96xf32>
    %cst_72 = arith.constant dense<0.000000e+00> : vector<2x96xf32>
    %162 = tpu.matmul %144, %4, %cst_72 {dimension_numbers = #tpu.dot_dimension_numbers<[1], [0], [0], [1], [0, 0, 1, 1], [], []>} : vector<2x32xf32>, vector<32x96xf32>, vector<2x96xf32> -> vector<2x96xf32>
    %163 = arith.addf %161, %162 : vector<2x96xf32>
    %164 = vector.extract_strided_slice %163 {offsets = [0, 0], sizes = [2, 32], strides = [1, 1]} : vector<2x96xf32> to vector<2x32xf32>
    %cst_73 = arith.constant 0.000000e+00 : f32
    %165 = vector.broadcast %cst_73 : f32 to vector<2x32xf32>
    %166 = arith.subf %165, %164 : vector<2x32xf32>
    %167 = math.exp %166 : vector<2x32xf32>
    %cst_74 = arith.constant 1.000000e+00 : f32
    %168 = vector.broadcast %cst_74 : f32 to vector<2x32xf32>
    %169 = arith.addf %168, %167 : vector<2x32xf32>
    %cst_75 = arith.constant 1.000000e+00 : f32
    %170 = vector.broadcast %cst_75 : f32 to vector<2x32xf32>
    %171 = arith.divf %170, %169 : vector<2x32xf32>
    %172 = vector.extract_strided_slice %163 {offsets = [0, 32], sizes = [2, 32], strides = [1, 1]} : vector<2x96xf32> to vector<2x32xf32>
    %cst_76 = arith.constant 0.000000e+00 : f32
    %173 = vector.broadcast %cst_76 : f32 to vector<2x32xf32>
    %174 = arith.subf %173, %172 : vector<2x32xf32>
    %175 = math.exp %174 : vector<2x32xf32>
    %cst_77 = arith.constant 1.000000e+00 : f32
    %176 = vector.broadcast %cst_77 : f32 to vector<2x32xf32>
    %177 = arith.addf %176, %175 : vector<2x32xf32>
    %cst_78 = arith.constant 1.000000e+00 : f32
    %178 = vector.broadcast %cst_78 : f32 to vector<2x32xf32>
    %179 = arith.divf %178, %177 : vector<2x32xf32>
    %180 = vector.extract_strided_slice %161 {offsets = [0, 64], sizes = [2, 32], strides = [1, 1]} : vector<2x96xf32> to vector<2x32xf32>
    %181 = vector.extract_strided_slice %162 {offsets = [0, 64], sizes = [2, 32], strides = [1, 1]} : vector<2x96xf32> to vector<2x32xf32>
    %182 = vector.broadcast %6 : vector<1x32xf32> to vector<2x32xf32>
    %183 = arith.addf %181, %182 : vector<2x32xf32>
    %184 = arith.mulf %171, %183 : vector<2x32xf32>
    %185 = arith.addf %180, %184 : vector<2x32xf32>
    %186 = math.tanh %185 : vector<2x32xf32>
    %cst_79 = arith.constant 1.000000e+00 : f32
    %187 = vector.broadcast %cst_79 : f32 to vector<2x32xf32>
    %188 = arith.subf %187, %179 : vector<2x32xf32>
    %189 = arith.mulf %188, %186 : vector<2x32xf32>
    %190 = arith.mulf %179, %144 : vector<2x32xf32>
    %191 = arith.addf %189, %190 : vector<2x32xf32>
    %c0_80 = arith.constant 0 : index
    %192 = arith.index_cast %153 : i32 to index
    %c0_81 = arith.constant 0 : index
    %c0_82 = arith.constant 0 : index
    %193 = vector.load %arg6[%c0_80, %192, %c0_81, %c0_82] : memref<1x8x2x32xf32, #tpu.memory_space<vmem>>, vector<1x1x2x32xf32>
    %194 = vector.shape_cast %193 : vector<1x1x2x32xf32> to vector<2x32xf32>
    %195 = vector.shape_cast %191 : vector<2x32xf32> to vector<1x1x2x32xf32>
    tpu.vector_store %arg6[%c0_80, %192, %c0_81, %c0_82], %195 {strides = array<i32>} : memref<1x8x2x32xf32, #tpu.memory_space<vmem>>, vector<1x1x2x32xf32>,
    %c4_i32 = arith.constant 4 : i32
    %c1_i32_83 = arith.constant 1 : i32
    %196 = arith.subi %c1_i32_83, %arg0 : i32
    %197 = arith.muli %196, %c4_i32 : i32
    %c7_i32_84 = arith.constant 7 : i32
    %198 = arith.subi %c7_i32_84, %c4_i32 : i32
    %199 = arith.muli %arg0, %198 : i32
    %200 = arith.addi %197, %199 : i32
    %c0_85 = arith.constant 0 : index
    %201 = arith.index_cast %200 : i32 to index
    %c0_86 = arith.constant 0 : index
    %c0_87 = arith.constant 0 : index
    %202 = vector.load %arg2[%c0_85, %201, %c0_86, %c0_87] : memref<1x8x2x96xf32, #tpu.memory_space<vmem>>, vector<1x1x2x96xf32>
    %203 = vector.shape_cast %202 : vector<1x1x2x96xf32> to vector<2x96xf32>
    %c0_88 = arith.constant 0 : index
    %204 = arith.index_cast %200 : i32 to index
    %c0_89 = arith.constant 0 : index
    %c0_90 = arith.constant 0 : index
    %205 = vector.load %arg3[%c0_88, %204, %c0_89, %c0_90] : memref<1x8x1x96xf32, #tpu.memory_space<vmem>>, vector<1x1x1x96xf32>
    %206 = vector.shape_cast %205 : vector<1x1x1x96xf32> to vector<1x96xf32>
    %207 = vector.broadcast %206 : vector<1x96xf32> to vector<2x96xf32>
    %208 = arith.addf %203, %207 : vector<2x96xf32>
    %cst_91 = arith.constant dense<0.000000e+00> : vector<2x96xf32>
    %209 = tpu.matmul %191, %4, %cst_91 {dimension_numbers = #tpu.dot_dimension_numbers<[1], [0], [0], [1], [0, 0, 1, 1], [], []>} : vector<2x32xf32>, vector<32x96xf32>, vector<2x96xf32> -> vector<2x96xf32>
    %210 = arith.addf %208, %209 : vector<2x96xf32>
    %211 = vector.extract_strided_slice %210 {offsets = [0, 0], sizes = [2, 32], strides = [1, 1]} : vector<2x96xf32> to vector<2x32xf32>
    %cst_92 = arith.constant 0.000000e+00 : f32
    %212 = vector.broadcast %cst_92 : f32 to vector<2x32xf32>
    %213 = arith.subf %212, %211 : vector<2x32xf32>
    %214 = math.exp %213 : vector<2x32xf32>
    %cst_93 = arith.constant 1.000000e+00 : f32
    %215 = vector.broadcast %cst_93 : f32 to vector<2x32xf32>
    %216 = arith.addf %215, %214 : vector<2x32xf32>
    %cst_94 = arith.constant 1.000000e+00 : f32
    %217 = vector.broadcast %cst_94 : f32 to vector<2x32xf32>
    %218 = arith.divf %217, %216 : vector<2x32xf32>
    %219 = vector.extract_strided_slice %210 {offsets = [0, 32], sizes = [2, 32], strides = [1, 1]} : vector<2x96xf32> to vector<2x32xf32>
    %cst_95 = arith.constant 0.000000e+00 : f32
    %220 = vector.broadcast %cst_95 : f32 to vector<2x32xf32>
    %221 = arith.subf %220, %219 : vector<2x32xf32>
    %222 = math.exp %221 : vector<2x32xf32>
    %cst_96 = arith.constant 1.000000e+00 : f32
    %223 = vector.broadcast %cst_96 : f32 to vector<2x32xf32>
    %224 = arith.addf %223, %222 : vector<2x32xf32>
    %cst_97 = arith.constant 1.000000e+00 : f32
    %225 = vector.broadcast %cst_97 : f32 to vector<2x32xf32>
    %226 = arith.divf %225, %224 : vector<2x32xf32>
    %227 = vector.extract_strided_slice %208 {offsets = [0, 64], sizes = [2, 32], strides = [1, 1]} : vector<2x96xf32> to vector<2x32xf32>
    %228 = vector.extract_strided_slice %209 {offsets = [0, 64], sizes = [2, 32], strides = [1, 1]} : vector<2x96xf32> to vector<2x32xf32>
    %229 = vector.broadcast %6 : vector<1x32xf32> to vector<2x32xf32>
    %230 = arith.addf %228, %229 : vector<2x32xf32>
    %231 = arith.mulf %218, %230 : vector<2x32xf32>
    %232 = arith.addf %227, %231 : vector<2x32xf32>
    %233 = math.tanh %232 : vector<2x32xf32>
    %cst_98 = arith.constant 1.000000e+00 : f32
    %234 = vector.broadcast %cst_98 : f32 to vector<2x32xf32>
    %235 = arith.subf %234, %226 : vector<2x32xf32>
    %236 = arith.mulf %235, %233 : vector<2x32xf32>
    %237 = arith.mulf %226, %191 : vector<2x32xf32>
    %238 = arith.addf %236, %237 : vector<2x32xf32>
    %c0_99 = arith.constant 0 : index
    %239 = arith.index_cast %200 : i32 to index
    %c0_100 = arith.constant 0 : index
    %c0_101 = arith.constant 0 : index
    %240 = vector.load %arg6[%c0_99, %239, %c0_100, %c0_101] : memref<1x8x2x32xf32, #tpu.memory_space<vmem>>, vector<1x1x2x32xf32>
    %241 = vector.shape_cast %240 : vector<1x1x2x32xf32> to vector<2x32xf32>
    %242 = vector.shape_cast %238 : vector<2x32xf32> to vector<1x1x2x32xf32>
    tpu.vector_store %arg6[%c0_99, %239, %c0_100, %c0_101], %242 {strides = array<i32>} : memref<1x8x2x32xf32, #tpu.memory_space<vmem>>, vector<1x1x2x32xf32>,
    %c5_i32 = arith.constant 5 : i32
    %c1_i32_102 = arith.constant 1 : i32
    %243 = arith.subi %c1_i32_102, %arg0 : i32
    %244 = arith.muli %243, %c5_i32 : i32
    %c7_i32_103 = arith.constant 7 : i32
    %245 = arith.subi %c7_i32_103, %c5_i32 : i32
    %246 = arith.muli %arg0, %245 : i32
    %247 = arith.addi %244, %246 : i32
    %c0_104 = arith.constant 0 : index
    %248 = arith.index_cast %247 : i32 to index
    %c0_105 = arith.constant 0 : index
    %c0_106 = arith.constant 0 : index
    %249 = vector.load %arg2[%c0_104, %248, %c0_105, %c0_106] : memref<1x8x2x96xf32, #tpu.memory_space<vmem>>, vector<1x1x2x96xf32>
    %250 = vector.shape_cast %249 : vector<1x1x2x96xf32> to vector<2x96xf32>
    %c0_107 = arith.constant 0 : index
    %251 = arith.index_cast %247 : i32 to index
    %c0_108 = arith.constant 0 : index
    %c0_109 = arith.constant 0 : index
    %252 = vector.load %arg3[%c0_107, %251, %c0_108, %c0_109] : memref<1x8x1x96xf32, #tpu.memory_space<vmem>>, vector<1x1x1x96xf32>
    %253 = vector.shape_cast %252 : vector<1x1x1x96xf32> to vector<1x96xf32>
    %254 = vector.broadcast %253 : vector<1x96xf32> to vector<2x96xf32>
    %255 = arith.addf %250, %254 : vector<2x96xf32>
    %cst_110 = arith.constant dense<0.000000e+00> : vector<2x96xf32>
    %256 = tpu.matmul %238, %4, %cst_110 {dimension_numbers = #tpu.dot_dimension_numbers<[1], [0], [0], [1], [0, 0, 1, 1], [], []>} : vector<2x32xf32>, vector<32x96xf32>, vector<2x96xf32> -> vector<2x96xf32>
    %257 = arith.addf %255, %256 : vector<2x96xf32>
    %258 = vector.extract_strided_slice %257 {offsets = [0, 0], sizes = [2, 32], strides = [1, 1]} : vector<2x96xf32> to vector<2x32xf32>
    %cst_111 = arith.constant 0.000000e+00 : f32
    %259 = vector.broadcast %cst_111 : f32 to vector<2x32xf32>
    %260 = arith.subf %259, %258 : vector<2x32xf32>
    %261 = math.exp %260 : vector<2x32xf32>
    %cst_112 = arith.constant 1.000000e+00 : f32
    %262 = vector.broadcast %cst_112 : f32 to vector<2x32xf32>
    %263 = arith.addf %262, %261 : vector<2x32xf32>
    %cst_113 = arith.constant 1.000000e+00 : f32
    %264 = vector.broadcast %cst_113 : f32 to vector<2x32xf32>
    %265 = arith.divf %264, %263 : vector<2x32xf32>
    %266 = vector.extract_strided_slice %257 {offsets = [0, 32], sizes = [2, 32], strides = [1, 1]} : vector<2x96xf32> to vector<2x32xf32>
    %cst_114 = arith.constant 0.000000e+00 : f32
    %267 = vector.broadcast %cst_114 : f32 to vector<2x32xf32>
    %268 = arith.subf %267, %266 : vector<2x32xf32>
    %269 = math.exp %268 : vector<2x32xf32>
    %cst_115 = arith.constant 1.000000e+00 : f32
    %270 = vector.broadcast %cst_115 : f32 to vector<2x32xf32>
    %271 = arith.addf %270, %269 : vector<2x32xf32>
    %cst_116 = arith.constant 1.000000e+00 : f32
    %272 = vector.broadcast %cst_116 : f32 to vector<2x32xf32>
    %273 = arith.divf %272, %271 : vector<2x32xf32>
    %274 = vector.extract_strided_slice %255 {offsets = [0, 64], sizes = [2, 32], strides = [1, 1]} : vector<2x96xf32> to vector<2x32xf32>
    %275 = vector.extract_strided_slice %256 {offsets = [0, 64], sizes = [2, 32], strides = [1, 1]} : vector<2x96xf32> to vector<2x32xf32>
    %276 = vector.broadcast %6 : vector<1x32xf32> to vector<2x32xf32>
    %277 = arith.addf %275, %276 : vector<2x32xf32>
    %278 = arith.mulf %265, %277 : vector<2x32xf32>
    %279 = arith.addf %274, %278 : vector<2x32xf32>
    %280 = math.tanh %279 : vector<2x32xf32>
    %cst_117 = arith.constant 1.000000e+00 : f32
    %281 = vector.broadcast %cst_117 : f32 to vector<2x32xf32>
    %282 = arith.subf %281, %273 : vector<2x32xf32>
    %283 = arith.mulf %282, %280 : vector<2x32xf32>
    %284 = arith.mulf %273, %238 : vector<2x32xf32>
    %285 = arith.addf %283, %284 : vector<2x32xf32>
    %c0_118 = arith.constant 0 : index
    %286 = arith.index_cast %247 : i32 to index
    %c0_119 = arith.constant 0 : index
    %c0_120 = arith.constant 0 : index
    %287 = vector.load %arg6[%c0_118, %286, %c0_119, %c0_120] : memref<1x8x2x32xf32, #tpu.memory_space<vmem>>, vector<1x1x2x32xf32>
    %288 = vector.shape_cast %287 : vector<1x1x2x32xf32> to vector<2x32xf32>
    %289 = vector.shape_cast %285 : vector<2x32xf32> to vector<1x1x2x32xf32>
    tpu.vector_store %arg6[%c0_118, %286, %c0_119, %c0_120], %289 {strides = array<i32>} : memref<1x8x2x32xf32, #tpu.memory_space<vmem>>, vector<1x1x2x32xf32>,
    %c6_i32 = arith.constant 6 : i32
    %c1_i32_121 = arith.constant 1 : i32
    %290 = arith.subi %c1_i32_121, %arg0 : i32
    %291 = arith.muli %290, %c6_i32 : i32
    %c7_i32_122 = arith.constant 7 : i32
    %292 = arith.subi %c7_i32_122, %c6_i32 : i32
    %293 = arith.muli %arg0, %292 : i32
    %294 = arith.addi %291, %293 : i32
    %c0_123 = arith.constant 0 : index
    %295 = arith.index_cast %294 : i32 to index
    %c0_124 = arith.constant 0 : index
    %c0_125 = arith.constant 0 : index
    %296 = vector.load %arg2[%c0_123, %295, %c0_124, %c0_125] : memref<1x8x2x96xf32, #tpu.memory_space<vmem>>, vector<1x1x2x96xf32>
    %297 = vector.shape_cast %296 : vector<1x1x2x96xf32> to vector<2x96xf32>
    %c0_126 = arith.constant 0 : index
    %298 = arith.index_cast %294 : i32 to index
    %c0_127 = arith.constant 0 : index
    %c0_128 = arith.constant 0 : index
    %299 = vector.load %arg3[%c0_126, %298, %c0_127, %c0_128] : memref<1x8x1x96xf32, #tpu.memory_space<vmem>>, vector<1x1x1x96xf32>
    %300 = vector.shape_cast %299 : vector<1x1x1x96xf32> to vector<1x96xf32>
    %301 = vector.broadcast %300 : vector<1x96xf32> to vector<2x96xf32>
    %302 = arith.addf %297, %301 : vector<2x96xf32>
    %cst_129 = arith.constant dense<0.000000e+00> : vector<2x96xf32>
    %303 = tpu.matmul %285, %4, %cst_129 {dimension_numbers = #tpu.dot_dimension_numbers<[1], [0], [0], [1], [0, 0, 1, 1], [], []>} : vector<2x32xf32>, vector<32x96xf32>, vector<2x96xf32> -> vector<2x96xf32>
    %304 = arith.addf %302, %303 : vector<2x96xf32>
    %305 = vector.extract_strided_slice %304 {offsets = [0, 0], sizes = [2, 32], strides = [1, 1]} : vector<2x96xf32> to vector<2x32xf32>
    %cst_130 = arith.constant 0.000000e+00 : f32
    %306 = vector.broadcast %cst_130 : f32 to vector<2x32xf32>
    %307 = arith.subf %306, %305 : vector<2x32xf32>
    %308 = math.exp %307 : vector<2x32xf32>
    %cst_131 = arith.constant 1.000000e+00 : f32
    %309 = vector.broadcast %cst_131 : f32 to vector<2x32xf32>
    %310 = arith.addf %309, %308 : vector<2x32xf32>
    %cst_132 = arith.constant 1.000000e+00 : f32
    %311 = vector.broadcast %cst_132 : f32 to vector<2x32xf32>
    %312 = arith.divf %311, %310 : vector<2x32xf32>
    %313 = vector.extract_strided_slice %304 {offsets = [0, 32], sizes = [2, 32], strides = [1, 1]} : vector<2x96xf32> to vector<2x32xf32>
    %cst_133 = arith.constant 0.000000e+00 : f32
    %314 = vector.broadcast %cst_133 : f32 to vector<2x32xf32>
    %315 = arith.subf %314, %313 : vector<2x32xf32>
    %316 = math.exp %315 : vector<2x32xf32>
    %cst_134 = arith.constant 1.000000e+00 : f32
    %317 = vector.broadcast %cst_134 : f32 to vector<2x32xf32>
    %318 = arith.addf %317, %316 : vector<2x32xf32>
    %cst_135 = arith.constant 1.000000e+00 : f32
    %319 = vector.broadcast %cst_135 : f32 to vector<2x32xf32>
    %320 = arith.divf %319, %318 : vector<2x32xf32>
    %321 = vector.extract_strided_slice %302 {offsets = [0, 64], sizes = [2, 32], strides = [1, 1]} : vector<2x96xf32> to vector<2x32xf32>
    %322 = vector.extract_strided_slice %303 {offsets = [0, 64], sizes = [2, 32], strides = [1, 1]} : vector<2x96xf32> to vector<2x32xf32>
    %323 = vector.broadcast %6 : vector<1x32xf32> to vector<2x32xf32>
    %324 = arith.addf %322, %323 : vector<2x32xf32>
    %325 = arith.mulf %312, %324 : vector<2x32xf32>
    %326 = arith.addf %321, %325 : vector<2x32xf32>
    %327 = math.tanh %326 : vector<2x32xf32>
    %cst_136 = arith.constant 1.000000e+00 : f32
    %328 = vector.broadcast %cst_136 : f32 to vector<2x32xf32>
    %329 = arith.subf %328, %320 : vector<2x32xf32>
    %330 = arith.mulf %329, %327 : vector<2x32xf32>
    %331 = arith.mulf %320, %285 : vector<2x32xf32>
    %332 = arith.addf %330, %331 : vector<2x32xf32>
    %c0_137 = arith.constant 0 : index
    %333 = arith.index_cast %294 : i32 to index
    %c0_138 = arith.constant 0 : index
    %c0_139 = arith.constant 0 : index
    %334 = vector.load %arg6[%c0_137, %333, %c0_138, %c0_139] : memref<1x8x2x32xf32, #tpu.memory_space<vmem>>, vector<1x1x2x32xf32>
    %335 = vector.shape_cast %334 : vector<1x1x2x32xf32> to vector<2x32xf32>
    %336 = vector.shape_cast %332 : vector<2x32xf32> to vector<1x1x2x32xf32>
    tpu.vector_store %arg6[%c0_137, %333, %c0_138, %c0_139], %336 {strides = array<i32>} : memref<1x8x2x32xf32, #tpu.memory_space<vmem>>, vector<1x1x2x32xf32>,
    %c7_i32_140 = arith.constant 7 : i32
    %c1_i32_141 = arith.constant 1 : i32
    %337 = arith.subi %c1_i32_141, %arg0 : i32
    %338 = arith.muli %337, %c7_i32_140 : i32
    %c7_i32_142 = arith.constant 7 : i32
    %339 = arith.subi %c7_i32_142, %c7_i32_140 : i32
    %340 = arith.muli %arg0, %339 : i32
    %341 = arith.addi %338, %340 : i32
    %c0_143 = arith.constant 0 : index
    %342 = arith.index_cast %341 : i32 to index
    %c0_144 = arith.constant 0 : index
    %c0_145 = arith.constant 0 : index
    %343 = vector.load %arg2[%c0_143, %342, %c0_144, %c0_145] : memref<1x8x2x96xf32, #tpu.memory_space<vmem>>, vector<1x1x2x96xf32>
    %344 = vector.shape_cast %343 : vector<1x1x2x96xf32> to vector<2x96xf32>
    %c0_146 = arith.constant 0 : index
    %345 = arith.index_cast %341 : i32 to index
    %c0_147 = arith.constant 0 : index
    %c0_148 = arith.constant 0 : index
    %346 = vector.load %arg3[%c0_146, %345, %c0_147, %c0_148] : memref<1x8x1x96xf32, #tpu.memory_space<vmem>>, vector<1x1x1x96xf32>
    %347 = vector.shape_cast %346 : vector<1x1x1x96xf32> to vector<1x96xf32>
    %348 = vector.broadcast %347 : vector<1x96xf32> to vector<2x96xf32>
    %349 = arith.addf %344, %348 : vector<2x96xf32>
    %cst_149 = arith.constant dense<0.000000e+00> : vector<2x96xf32>
    %350 = tpu.matmul %332, %4, %cst_149 {dimension_numbers = #tpu.dot_dimension_numbers<[1], [0], [0], [1], [0, 0, 1, 1], [], []>} : vector<2x32xf32>, vector<32x96xf32>, vector<2x96xf32> -> vector<2x96xf32>
    %351 = arith.addf %349, %350 : vector<2x96xf32>
    %352 = vector.extract_strided_slice %351 {offsets = [0, 0], sizes = [2, 32], strides = [1, 1]} : vector<2x96xf32> to vector<2x32xf32>
    %cst_150 = arith.constant 0.000000e+00 : f32
    %353 = vector.broadcast %cst_150 : f32 to vector<2x32xf32>
    %354 = arith.subf %353, %352 : vector<2x32xf32>
    %355 = math.exp %354 : vector<2x32xf32>
    %cst_151 = arith.constant 1.000000e+00 : f32
    %356 = vector.broadcast %cst_151 : f32 to vector<2x32xf32>
    %357 = arith.addf %356, %355 : vector<2x32xf32>
    %cst_152 = arith.constant 1.000000e+00 : f32
    %358 = vector.broadcast %cst_152 : f32 to vector<2x32xf32>
    %359 = arith.divf %358, %357 : vector<2x32xf32>
    %360 = vector.extract_strided_slice %351 {offsets = [0, 32], sizes = [2, 32], strides = [1, 1]} : vector<2x96xf32> to vector<2x32xf32>
    %cst_153 = arith.constant 0.000000e+00 : f32
    %361 = vector.broadcast %cst_153 : f32 to vector<2x32xf32>
    %362 = arith.subf %361, %360 : vector<2x32xf32>
    %363 = math.exp %362 : vector<2x32xf32>
    %cst_154 = arith.constant 1.000000e+00 : f32
    %364 = vector.broadcast %cst_154 : f32 to vector<2x32xf32>
    %365 = arith.addf %364, %363 : vector<2x32xf32>
    %cst_155 = arith.constant 1.000000e+00 : f32
    %366 = vector.broadcast %cst_155 : f32 to vector<2x32xf32>
    %367 = arith.divf %366, %365 : vector<2x32xf32>
    %368 = vector.extract_strided_slice %349 {offsets = [0, 64], sizes = [2, 32], strides = [1, 1]} : vector<2x96xf32> to vector<2x32xf32>
    %369 = vector.extract_strided_slice %350 {offsets = [0, 64], sizes = [2, 32], strides = [1, 1]} : vector<2x96xf32> to vector<2x32xf32>
    %370 = vector.broadcast %6 : vector<1x32xf32> to vector<2x32xf32>
    %371 = arith.addf %369, %370 : vector<2x32xf32>
    %372 = arith.mulf %359, %371 : vector<2x32xf32>
    %373 = arith.addf %368, %372 : vector<2x32xf32>
    %374 = math.tanh %373 : vector<2x32xf32>
    %cst_156 = arith.constant 1.000000e+00 : f32
    %375 = vector.broadcast %cst_156 : f32 to vector<2x32xf32>
    %376 = arith.subf %375, %367 : vector<2x32xf32>
    %377 = arith.mulf %376, %374 : vector<2x32xf32>
    %378 = arith.mulf %367, %332 : vector<2x32xf32>
    %379 = arith.addf %377, %378 : vector<2x32xf32>
    %c0_157 = arith.constant 0 : index
    %380 = arith.index_cast %341 : i32 to index
    %c0_158 = arith.constant 0 : index
    %c0_159 = arith.constant 0 : index
    %381 = vector.load %arg6[%c0_157, %380, %c0_158, %c0_159] : memref<1x8x2x32xf32, #tpu.memory_space<vmem>>, vector<1x1x2x32xf32>
    %382 = vector.shape_cast %381 : vector<1x1x2x32xf32> to vector<2x32xf32>
    %383 = vector.shape_cast %379 : vector<2x32xf32> to vector<1x1x2x32xf32>
    tpu.vector_store %arg6[%c0_157, %380, %c0_158, %c0_159], %383 {strides = array<i32>} : memref<1x8x2x32xf32, #tpu.memory_space<vmem>>, vector<1x1x2x32xf32>,
    %c8_i32 = arith.constant 8 : i32
    %c0_160 = arith.constant 0 : index
    %c0_161 = arith.constant 0 : index
    %384 = vector.load %arg7[%c0_160, %c0_161] : memref<2x32xf32, #tpu.memory_space<vmem>>, vector<2x32xf32>
    tpu.vector_store %arg7[%c0_160, %c0_161], %379 {strides = array<i32>} : memref<2x32xf32, #tpu.memory_space<vmem>>, vector<2x32xf32>,
    return
  }
  func.func @transform_0(%arg0: i32, %arg1: i32) -> (i32, i32, i32, i32) {
    %c1_i32 = arith.constant 1 : i32
    %0 = arith.subi %c1_i32, %arg0 : i32
    %1 = arith.muli %0, %arg1 : i32
    %c0_i32 = arith.constant 0 : i32
    %2 = arith.subi %c0_i32, %arg1 : i32
    %3 = arith.muli %arg0, %2 : i32
    %4 = arith.addi %1, %3 : i32
    %c0_i32_0 = arith.constant 0 : i32
    %c0_i32_1 = arith.constant 0 : i32
    %c0_i32_2 = arith.constant 0 : i32
    return %arg0, %4, %c0_i32_0, %c0_i32_1 : i32, i32, i32, i32
  }
  func.func @transform_1(%arg0: i32, %arg1: i32) -> (i32, i32, i32, i32) {
    %c1_i32 = arith.constant 1 : i32
    %0 = arith.subi %c1_i32, %arg0 : i32
    %1 = arith.muli %0, %arg1 : i32
    %c0_i32 = arith.constant 0 : i32
    %2 = arith.subi %c0_i32, %arg1 : i32
    %3 = arith.muli %arg0, %2 : i32
    %4 = arith.addi %1, %3 : i32
    %c0_i32_0 = arith.constant 0 : i32
    %c0_i32_1 = arith.constant 0 : i32
    %c0_i32_2 = arith.constant 0 : i32
    return %arg0, %4, %c0_i32_0, %c0_i32_1 : i32, i32, i32, i32
  }
  func.func @transform_2(%arg0: i32, %arg1: i32) -> (i32, i32, i32) {
    %c0_i32 = arith.constant 0 : i32
    %c0_i32_0 = arith.constant 0 : i32
    %c0_i32_1 = arith.constant 0 : i32
    return %arg0, %c0_i32, %c0_i32_0 : i32, i32, i32
  }
  func.func @transform_3(%arg0: i32, %arg1: i32) -> (i32, i32, i32) {
    %c0_i32 = arith.constant 0 : i32
    %c0_i32_0 = arith.constant 0 : i32
    %c0_i32_1 = arith.constant 0 : i32
    return %arg0, %c0_i32, %c0_i32_0 : i32, i32, i32
  }
  func.func @transform_4(%arg0: i32, %arg1: i32) -> (i32, i32, i32, i32) {
    %c1_i32 = arith.constant 1 : i32
    %0 = arith.subi %c1_i32, %arg0 : i32
    %1 = arith.muli %0, %arg1 : i32
    %c0_i32 = arith.constant 0 : i32
    %2 = arith.subi %c0_i32, %arg1 : i32
    %3 = arith.muli %arg0, %2 : i32
    %4 = arith.addi %1, %3 : i32
    %c0_i32_0 = arith.constant 0 : i32
    %c0_i32_1 = arith.constant 0 : i32
    %c0_i32_2 = arith.constant 0 : i32
    return %arg0, %4, %c0_i32_0, %c0_i32_1 : i32, i32, i32, i32
  }
}

</mosaic_0001>

<bundles_post_ra>
// kernel: tile.0
= control target key start
LH: loop header
LB: loop body
LE: loop exit
PB: predicated region body
PF: predicated region fallthrough
CT: control target
= control target key end

     0   :  { %vm3_vm0 = vcmask 7168   ;;  %s13_s9 = smov 127   ;;  %s33_s0 = inlined_call_operand.vmem [shape: f32[8,2], index: 0, kind: input, shape index: {}]   ;;  %s34_s1 = inlined_call_operand.vmem [shape: f32[16,1], index: 1, kind: output, shape index: {}]  }
   0x1   :  { %v2_v0 = vld [vmem:[%s33_s0] sm:$0xff]  }
   0x2   :  { %4 = vst.msk [vmem:[%s34_s1] ss:$2 sm:$0xff] %vm3_vm0, %v2_v0   ;;  %6 = vrot.lane.b32.xlu0 %v2_v0, %s13_s9 }
  0x74   :  { %v7_v1 = vpop.permute.xlu0 %6  }
  0x75   :  { %11 = vst.msk [vmem:[%s34_s1 + $0x1] ss:$2 sm:$0xff] %vm3_vm0, %v7_v1  }

// kernel: tile.8
= control target key start
LH: loop header
LB: loop body
LE: loop exit
PB: predicated region body
PF: predicated region fallthrough
CT: control target
= control target key end

     0   :  { %s22_s0 = inlined_call_operand.vmem [shape: f32[2], index: 0, kind: input, shape index: {}]   ;;  %s23_s1 = inlined_call_operand.vmem [shape: f32[8,2], index: 1, kind: output, shape index: {}]  }
   0x1   :  { %v4_v0 = vld [vmem:[%s22_s0] ss:$0 sm:$0xff] }
   0x2   :  { %5 = vst [vmem:[%s23_s1] sm:$0xff] %v4_v0 }

// kernel: encoder_forward.2
= control target key start
LH: loop header
LB: loop body
LE: loop exit
PB: predicated region body
PF: predicated region fallthrough
CT: control target
= control target key end

     0   :  { %v252_v0 = vmov 0   ;;  %vm34_vm0 = vcmask 261120   ;;  %vm116_vm1 = vcmask 785408   ;;  %s321_s1 = inlined_call_operand.vmem [shape: f32[16,1], index: 1, kind: input, shape index: {}]   ;;  %s322_s2 = inlined_call_operand.vmem [shape: f32[2,32,96], index: 2, kind: input, shape index: {}]   ;;  %s323_s0 = inlined_call_operand.vmem [shape: f32[16,32], index: 0, kind: input, shape index: {}]   ;;  %s324_s3 = inlined_call_operand.vmem [shape: f32[2,16,96], index: 3, kind: output, shape index: {}]  }
   0x1   :  { %251 = vset.pattern.permute.xlu0 %v252_v0  ;;  %v16_v1 = vld [vmem:[%s321_s1] sm:$0xff]  ;;  %v33_v2 = vld [vmem:[%s322_s2 + $0x18] sm:$0xff]  ;;  %v32_v4 = vld [vmem:[%s322_s2 + $0x10] sm:$0xff] }
   0x2   :  { %20 = vperm.xlu0 %251, %v16_v1   ;;  %228 = vmatprep.subr.mxu0 %v33_v2  ;;  %v211_v3 = vld [vmem:[%s322_s2 + $0x38] sm:$0xff]  ;;  %v17_v5 = vld [vmem:[%s321_s1 + $0x8] sm:$0xff]  ;;  %v210_v6 = vld [vmem:[%s322_s2 + $0x30] sm:$0xff] }
   0x3   :  { %239 = vmatprep.subr.mxu1 %v211_v3  ;;  %229 = vmatpush3.msra.mxu0 %v33_v2  ;;  %v31_v7 = vld [vmem:[%s322_s2 + $0x8] sm:$0xff]  ;;  %v30_v9 = vld [vmem:[%s322_s2] sm:$0xff] }
   0x4   :  { %240 = vmatpush3.msra.mxu1 %v211_v3  ;;  %230 = vmatprep.subr.mxu0 %v32_v4  ;;  %v209_v8 = vld [vmem:[%s322_s2 + $0x28] sm:$0xff]  ;;  %v208_v10 = vld [vmem:[%s322_s2 + $0x20] sm:$0xff] }
   0x5   :  { %241 = vmatprep.subr.mxu1 %v210_v6  ;;  %231 = vmatpush3.msra.mxu0 %v32_v4  ;;  %v14_v11 = vld [vmem:[%s323_s0] sm:$0xff]  ;;  %v15_v14 = vld [vmem:[%s323_s0 + $0x8] sm:$0xff] }
   0x6   :  { %25 = vperm.xlu0 %251, %v17_v5   ;;  %242 = vmatpush3.msra.mxu1 %v210_v6 }
   0x7   :  { %232 = vmatprep.subr.mxu0 %v31_v7  ;;  %243 = vmatprep.subr.mxu1 %v209_v8 }
   0x8   :  { %233 = vmatpush3.msra.mxu0 %v31_v7  ;;  %244 = vmatpush3.msra.mxu1 %v209_v8 }
   0x9   :  { %234 = vmatprep.subr.mxu0 %v30_v9  ;;  %245 = vmatprep.subr.mxu1 %v208_v10 }
   0xa   :  { %235 = vmatpush3.msra.mxu0 %v30_v9  ;;  %246 = vmatpush3.msra.mxu1 %v208_v10 }
  0x7d   :  { %v21_v12 = vpop.permute.xlu0 %20 }
  0x7e   :  { %v28_v13 = vmul.f32 %v21_v12, %v14_v11 }
  0x80   :  { %236 = vmatprep.mubr.msk.f32.mxu0 %vm34_vm0, %v28_v13  ;;  %247 = vmatprep.mubr.msk.f32.mxu1 %vm34_vm0, %v28_v13 }
  0x81   :  { %v26_v15 = vpop.permute.xlu0 %25 }
  0x82   :  { %v29_v16 = vmul.f32 %v26_v15, %v15_v14 }
  0x84   :  { %237 = vmatmul.mubr.msk.f32.vlgmr.msra.gmra.mxu0 %vm34_vm0, %v29_v16  ;;  %248 = vmatmul.mubr.msk.f32.vlgmr.msra.gmra.mxu1 %vm34_vm0, %v29_v16 }
 0x144   :  { %v238_v17 = vpop.f32.mrf.mxu0  ;;  %v249_v18 = vpop.f32.mrf.mxu1 }
 0x145   :  { %118 = vst.msk [vmem:[%s324_s3 + $0x8] sm:$0xff] %vm116_vm1, %v238_v17  ;;  %215 = vst.msk [vmem:[%s324_s3 + $0x18] sm:$0xff] %vm116_vm1, %v249_v18 }
 0x146   :  { %v107_v19 = vpop.f32.mrf.mxu0  ;;  %v190_v20 = vpop.f32.mrf.mxu1 }
 0x147   :  { %117 = vst.msk [vmem:[%s324_s3] sm:$0xff] %vm116_vm1, %v107_v19  ;;  %214 = vst.msk [vmem:[%s324_s3 + $0x10] sm:$0xff] %vm116_vm1, %v190_v20 }

// kernel: encoder_forward.3
= control target key start
LH: loop header
LB: loop body
LE: loop exit
PB: predicated region body
PF: predicated region fallthrough
CT: control target
= control target key end

     0   :  { %s1914_s15 = smov 0   ;;  %s1916_s16 = smov 0   ;;  %s2197_s0 = inlined_call_operand.vmem [shape: f32[2,8,2,96], index: 0, kind: input, shape index: {}]   ;;  %s2198_s1 = inlined_call_operand.vmem [shape: f32[2,8,1,96], index: 1, kind: input, shape index: {}]   ;;  %s2199_s2 = inlined_call_operand.vmem [shape: f32[2,32,96], index: 2, kind: input, shape index: {}]   ;;  %s2200_s3 = inlined_call_operand.vmem [shape: f32[2,1,32], index: 3, kind: input, shape index: {}]   ;;  %s2201_s4 = inlined_call_operand.vmem [shape: f32[2,8,2,32], index: 4, kind: output, shape index: {}]  }
   0x1   :  { %s1918_s17 = smov 0  }
   0x2 LB: > { %s26_s18 = sadd.s32 1, %s1878_s16  ;;  %p1613_p0 = scmp.ge.s32.totalorder %s1882_s17, 1  ;;  %s1882_s17 = sphi %s1918_s17, %s14_s17   ;;  %s1878_s16 = sphi %s1916_s16, %s2203_s16   ;;  %s1874_s15 = sphi %s1914_s15, %s2202_s15  }
   0x3   : > { %p28_p1 = scmp.ge.s32.totalorder %s26_s18, 2  ;;  %p267_p2 = scmp.lt.s32.totalorder %s1882_s17, 3 }
   0x5   : > { %s2205_s18 = smov (%p28_p1, %s26_s18), 0  ;;  %p268_p3 = pnand %p1613_p0, %p267_p2 }
   0x6   : > { %p338_p4 = scmp.lt.s32.totalorder (!%p268_p3), %s1874_s15, 1  ;;  %s1886_s27 = smov (!%p268_p3), 64  }
   0x7   : > { %271 = sbr.rel (%p268_p3) target bundleno = 5441 (0x1541), region = 36  ;;  %s1887_s28 = smov (!%p268_p3), 32  }
   0x8   : > { %s411_s5 = smul.u32 (!%p268_p3), 7, %s1874_s15  ;;  %s2043_s25 = ssub.s32 (!%p268_p3), 1, %s1874_s15 }
   0x9   : > { %s1621_s6 = smul.u32 (!%p268_p3), 14, %s1874_s15  ;;  %s1628_s7 = sshll.u32 (!%p268_p3), %s2043_s25, 1 }
   0xa   : > { %s783_s21 = smul.u32 (!%p268_p3), 3, %s2043_s25  ;;  %s1632_s22 = sshll.u32 (!%p268_p3), %s1874_s15, 2 }
   0xc   : > { %vm403_vm0 = vcmask 254976   ;;  %v1884_v0 = vmov 0.0   ;;  %vm1885_vm1 = vmmov 0   ;;  %s1941_s19 = scalar_select %p338_p4, %s1874_s15, 1  ;;  %vm424_vm2 = vcmask 261120  }
   0xd   : > { %1695 = vmatprep.subr.mxu0 %v1884_v0  ;;  %1703 = vmatprep.mubr.msk.f32.mxu0 %vm1885_vm1, %v1884_v0  ;;  %404 = vst.msk [vmem:[#allocation2] sm:$0x3] %vm403_vm0, %v1884_v0 }
   0xe   : > { %1706 = vmatprep.subr.mxu1 %v1884_v0  ;;  %1714 = vmatprep.mubr.msk.f32.mxu1 %vm1885_vm1, %v1884_v0  ;;  %s1653_s20 = sshll.u32 %s1941_s19, 5  ;;  %s378_s23 = scalar_lea.vmem %s2200_s3, %s1941_s19 }
   0xf   : > { %s375_s26 = scalar_lea.vmem %s2199_s2, %s1653_s20  ;;  %v1624_v1 = vld [vmem:[%s378_s23] ss:$0 sm:$0xff]  ;;  %s1652_s29 = sshll.u32 %s1941_s19, 4 }
  0x10   : > { %v1954_v2 = vld [vmem:[%s375_s26 + $0x18] sm:$0xff]  ;;  %v1956_v3 = vld [vmem:[%s375_s26 + $0x10] sm:$0xff]  ;;  %510 = vrot.lane.b32.xlu0 %v1624_v1, %s1886_s27  ;;  %v1962_v4 = vld [vmem:[%s375_s26 + $0x8] sm:$0xff]  ;;  %s1616_s30 = sshll.u32 %s1941_s19, 3  ;;  %s2003_s9 = scalar_lea.vmem %s2197_s0, %s1652_s29 }
  0x11   : > { %1696 = vmatpush3.msra.mxu0 %v1954_v2  ;;  %1707 = vmatpush3.msra.mxu1 %v1954_v2  ;;  %v1968_v5 = vld [vmem:[%s375_s26] sm:$0xff]  ;;  %s2008_s12 = scalar_lea.vmem %s2198_s1, %s1616_s30  ;;  %s413_s13 = scalar_lea.vmem %s2003_s9, %s1621_s6 }
  0x12   : > { %1697 = vmatprep.subr.mxu0 %v1884_v0  ;;  %1708 = vmatprep.subr.mxu1 %v1884_v0  ;;  %s415_s14 = scalar_lea.vmem %s2008_s12, %s411_s5  ;;  %v414_v11 = vld [vmem:[%s413_s13] sm:$0x3]  ;;  %s1888_s20 = smov 96  }
  0x13   : > { %1698 = vmatpush3.msra.mxu0 %v1956_v3  ;;  %1709 = vmatpush3.msra.mxu1 %v1956_v3  ;;  %v1622_v12 = vld [vmem:[%s415_s14] ss:$0 sm:$0xff]  ;;  %s2022_s23 = scalar_lea.vmem %s2201_s4, %s1652_s29  ;;  %s544_s19 = smul.u32 6, %s1874_s15 }
  0x14   : > { %1699 = vmatprep.subr.mxu0 %v1884_v0  ;;  %1710 = vmatprep.subr.mxu1 %v1884_v0  ;;  %v410_v6 = vld [vmem:[#allocation2] sm:$0x3]  ;;  %v423_v13 = vadd.f32 %v1622_v12, %v414_v11  ;;  %s540_s24 = scalar_lea.vmem %s2022_s23, %s1621_s6  ;;  %s664_s6 = smul.u32 5, %s1874_s15 }
  0x15   : > { %1700 = vmatpush3.msra.mxu0 %v1962_v4  ;;  %1711 = vmatpush3.msra.mxu1 %v1962_v4  ;;  %s2046_s26 = sadd.s32 %s544_s19, %s2043_s25 }
  0x16   : > { %1701 = vmatprep.subr.mxu0 %v1884_v0  ;;  %1712 = vmatprep.subr.mxu1 %v1884_v0  ;;  %s549_s30 = scalar_lea.vmem %s2008_s12, %s2046_s26  ;;  %s2072_s8 = sadd.s32 %s1628_s7, %s664_s6 }
  0x17   : > { %1702 = vmatpush3.msra.mxu0 %v1968_v5  ;;  %1713 = vmatpush3.msra.mxu1 %v1968_v5  ;;  %v1626_v36 = vld [vmem:[%s549_s30] ss:$0 sm:$0xff]  ;;  %s1629_s10 = sshll.u32 %s2072_s8, 1  ;;  %s669_s13 = scalar_lea.vmem %s2008_s12, %s2072_s8 }
  0x18   : > { %1704 = vmatmul.mubr.msk.f32.vlgmr.msra.gmra.mxu0 %vm424_vm2, %v410_v6  ;;  %1717 = vmatprep.subr.mxu0 %v1884_v0  ;;  %s667_s11 = scalar_lea.vmem %s2003_s9, %s1629_s10  ;;  %v1630_v59 = vld [vmem:[%s669_s13] ss:$0 sm:$0xff]  ;;  %s781_s14 = scalar_lea.vmem %s2022_s23, %s1629_s10 }
  0x19   : > { %1718 = vmatpush3.msra.mxu0 %v1954_v2  ;;  %1725 = vmatprep.mubr.msk.f32.mxu0 %vm1885_vm1, %v1884_v0  ;;  %v668_v58 = vld [vmem:[%s667_s11] sm:$0x3]  ;;  %s904_s30 = smul.u32 3, %s1874_s15 }
  0x1a   : > { %1719 = vmatprep.subr.mxu0 %v1884_v0  ;;  %1728 = vmatprep.subr.mxu1 %v1884_v0  ;;  %v677_v60 = vadd.f32 %v1630_v59, %v668_v58  ;;  %s1023_s13 = smul.u32 5, %s2043_s25 }
  0x1b   : > { %1720 = vmatpush3.msra.mxu0 %v1956_v3 }
  0x1c   : > { %1721 = vmatprep.subr.mxu0 %v1884_v0 }
  0x1d   : > { %1722 = vmatpush3.msra.mxu0 %v1962_v4 }
  0x1e   : > { %1723 = vmatprep.subr.mxu0 %v1884_v0 }
  0x1f   : > { %1724 = vmatpush3.msra.mxu0 %v1968_v5 }
  0x20   : > { %1739 = vmatprep.subr.mxu0 %v1884_v0 }
  0x82   : > { %v1990_v7 = vpop.permute.xlu0 %510 }
  0xd8   : > { %v494_v8 = vpop.f32.mrf.mxu0 }
  0xd9   : > { %v513_v9 = vadd.f32 %v1990_v7, %v494_v8  ;;  %v498_v14 = vadd.f32 %v494_v8, %v423_v13 }
  0xda   : > { %v1705_v10 = vpop.f32.mrf.mxu0 }
  0xdb   : > { %515 = vrot.lane.b32.xlu0 %v513_v9, %s1886_s27  ;;  %v499_v15 = vsub.f32 0.0, %v498_v14 }
  0xdd   : > { %v500_v16 = vmul.f32 1.442695, %v499_v15 }
  0xdf   : > { %531 = vrot.lane.b32.xlu0 %v410_v6, %s1887_s28  ;;  %1812 = vpow2.f32 %v500_v16  ;;  %s1625_s28 = sshll.u32 %s2046_s26, 1 }
  0xe0   : > { %s547_s29 = scalar_lea.vmem %s2003_s9, %s1625_s28  ;;  %s661_s5 = scalar_lea.vmem %s2022_s23, %s1625_s28 }
  0xe1   : > { %v548_v35 = vld [vmem:[%s547_s29] sm:$0x3] }
  0xe2   : > { %v557_v37 = vadd.f32 %v1626_v36, %v548_v35 }
  0xec   : > { %v1813_v17 = vpop.eup %1812 }
  0xed   : > { %v502_v18 = vadd.f32 1.0, %v1813_v17 }
  0xef   : > { %1814 = vrcp.f32 %v502_v18 }
  0xfc   : > { %v1815_v19 = vpop.eup %1814 }
  0xfd   : > { %v525_v26 = vsub.f32 1.0, %v1815_v19 }
 0x14d   : > { %v516_v20 = vpop.permute.xlu0 %515 }
 0x14e   : > { %v518_v21 = vmul.f32 %v1815_v19, %v516_v20 }
 0x150   : > { %520 = vrot.lane.b32.xlu1 %v518_v21, %s1886_s27 }
 0x151   : > { %v532_v25 = vpop.permute.xlu0 %531 }
 0x152   : > { %v534_v28 = vmul.f32 %v1815_v19, %v532_v25 }
 0x1c2   : > { %v521_v22 = vpop.permute.xlu1 %520 }
 0x1c3   : > { %v523_v23 = vadd.f32 %v521_v22, %v423_v13 }
 0x1c5   : > { %1816 = vtanh.f32 %v523_v23 }
 0x1d2   : > { %v1817_v24 = vpop.eup %1816 }
 0x1d3   : > { %527 = vrot.lane.b32.xlu1 %v1817_v24, %s1888_s20 }
 0x245   : > { %v528_v27 = vpop.permute.xlu1 %527 }
 0x246   : > { %v530_v29 = vmul.f32 %v528_v27, %v525_v26 }
 0x248   : > { %v535_v30 = vadd.f32 %v534_v28, %v530_v29 }
 0x24a   : > { %537 = vrot.lane.b32.xlu1 %v535_v30, %s1888_s20 }
 0x2bc   : > { %v538_v31 = vpop.permute.xlu1 %537 }
 0x2bd   : > { %542 = vst.msk [vmem:[%s540_s24] sm:$0x3] %vm403_vm0, %v538_v31  ;;  %1715 = vmatmul.mubr.msk.f32.vlgmr.msra.gmra.mxu1 %vm424_vm2, %v538_v31  ;;  %s2098_s24 = sadd.s32 %s1632_s22, %s783_s21 }
 0x2be   : > { %1729 = vmatpush3.msra.mxu1 %v1954_v2  ;;  %1736 = vmatprep.mubr.msk.f32.mxu1 %vm1885_vm1, %v1884_v0  ;;  %s1633_s19 = sshll.u32 %s2098_s24, 1  ;;  %s789_s28 = scalar_lea.vmem %s2008_s12, %s2098_s24 }
 0x2bf   : > { %1730 = vmatprep.subr.mxu1 %v1884_v0  ;;  %s787_s26 = scalar_lea.vmem %s2003_s9, %s1633_s19  ;;  %v1634_v24 = vld [vmem:[%s789_s28] ss:$0 sm:$0xff]  ;;  %s901_s29 = scalar_lea.vmem %s2022_s23, %s1633_s19 }
 0x2c0   : > { %1731 = vmatpush3.msra.mxu1 %v1956_v3  ;;  %v788_v23 = vld [vmem:[%s787_s26] sm:$0x3]  ;;  %s1143_s28 = smul.u32 6, %s2043_s25 }
 0x2c1   : > { %1732 = vmatprep.subr.mxu1 %v1884_v0  ;;  %v797_v25 = vadd.f32 %v1634_v24, %v788_v23 }
 0x2c2   : > { %1733 = vmatpush3.msra.mxu1 %v1962_v4 }
 0x2c3   : > { %1734 = vmatprep.subr.mxu1 %v1884_v0 }
 0x2c4   : > { %1735 = vmatpush3.msra.mxu1 %v1968_v5 }
 0x2c5   : > { %1750 = vmatprep.subr.mxu1 %v1884_v0 }
 0x37d   : > { %v626_v32 = vpop.f32.mrf.mxu1 }
 0x37e   : > { %v637_v33 = vadd.f32 %v626_v32, %v1990_v7  ;;  %v630_v38 = vadd.f32 %v626_v32, %v557_v37 }
 0x37f   : > { %v1716_v34 = vpop.f32.mrf.mxu1 }
 0x380   : > { %639 = vrot.lane.b32.xlu0 %v637_v33, %s1886_s27  ;;  %v631_v39 = vsub.f32 0.0, %v630_v38 }
 0x382   : > { %v632_v40 = vmul.f32 1.442695, %v631_v39 }
 0x384   : > { %1818 = vpow2.f32 %v632_v40 }
 0x391   : > { %v1819_v41 = vpop.eup %1818 }
 0x392   : > { %v634_v42 = vadd.f32 1.0, %v1819_v41 }
 0x394   : > { %1820 = vrcp.f32 %v634_v42 }
 0x3a1   : > { %v1821_v43 = vpop.eup %1820 }
 0x3a2   : > { %v649_v49 = vsub.f32 1.0, %v1821_v43  ;;  %v655_v51 = vmul.f32 %v1821_v43, %v535_v30 }
 0x3f2   : > { %v640_v44 = vpop.permute.xlu0 %639 }
 0x3f3   : > { %v642_v45 = vmul.f32 %v1821_v43, %v640_v44 }
 0x3f5   : > { %644 = vrot.lane.b32.xlu1 %v642_v45, %s1886_s27 }
 0x467   : > { %v645_v46 = vpop.permute.xlu1 %644 }
 0x468   : > { %v647_v47 = vadd.f32 %v645_v46, %v557_v37 }
 0x46a   : > { %1822 = vtanh.f32 %v647_v47 }
 0x477   : > { %v1823_v48 = vpop.eup %1822 }
 0x478   : > { %651 = vrot.lane.b32.xlu0 %v1823_v48, %s1888_s20 }
 0x4ea   : > { %v652_v50 = vpop.permute.xlu0 %651 }
 0x4eb   : > { %v654_v52 = vmul.f32 %v652_v50, %v649_v49 }
 0x4ed   : > { %v656_v53 = vadd.f32 %v655_v51, %v654_v52 }
 0x4ef   : > { %658 = vrot.lane.b32.xlu1 %v656_v53, %s1888_s20 }
 0x561   : > { %v659_v54 = vpop.permute.xlu1 %658 }
 0x562   : > { %662 = vst.msk [vmem:[%s661_s5] sm:$0x3] %vm403_vm0, %v659_v54  ;;  %1726 = vmatmul.mubr.msk.f32.vlgmr.msra.gmra.mxu0 %vm424_vm2, %v659_v54  ;;  %s1636_s5 = sshll.u32 %s2043_s25, 2 }
 0x563   : > { %1740 = vmatpush3.msra.mxu0 %v1954_v2  ;;  %1747 = vmatprep.mubr.msk.f32.mxu0 %vm1885_vm1, %v1884_v0  ;;  %s2123_s6 = sadd.s32 %s1636_s5, %s904_s30 }
 0x564   : > { %1741 = vmatprep.subr.mxu0 %v1884_v0  ;;  %s1637_s7 = sshll.u32 %s2123_s6, 1  ;;  %s909_s10 = scalar_lea.vmem %s2008_s12, %s2123_s6 }
 0x565   : > { %1742 = vmatpush3.msra.mxu0 %v1956_v3  ;;  %s907_s8 = scalar_lea.vmem %s2003_s9, %s1637_s7  ;;  %v1638_v47 = vld [vmem:[%s909_s10] ss:$0 sm:$0xff]  ;;  %s1021_s11 = scalar_lea.vmem %s2022_s23, %s1637_s7 }
 0x566   : > { %1743 = vmatprep.subr.mxu0 %v1884_v0  ;;  %v908_v46 = vld [vmem:[%s907_s8] sm:$0x3]  ;;  %s1262_s7 = smul.u32 7, %s2043_s25 }
 0x567   : > { %1744 = vmatpush3.msra.mxu0 %v1962_v4  ;;  %v917_v48 = vadd.f32 %v1638_v47, %v908_v46  ;;  %s1647_s8 = smul.u32 14, %s2043_s25 }
 0x568   : > { %1745 = vmatprep.subr.mxu0 %v1884_v0 }
 0x569   : > { %1746 = vmatpush3.msra.mxu0 %v1968_v5  ;;  %s1264_s10 = scalar_lea.vmem %s2003_s9, %s1647_s8 }
 0x56a   : > { %1761 = vmatprep.subr.mxu0 %v1884_v0 }
 0x622   : > { %v746_v55 = vpop.f32.mrf.mxu0 }
 0x623   : > { %v757_v56 = vadd.f32 %v746_v55, %v1990_v7  ;;  %v750_v61 = vadd.f32 %v746_v55, %v677_v60 }
 0x624   : > { %v1727_v57 = vpop.f32.mrf.mxu0 }
 0x625   : > { %759 = vrot.lane.b32.xlu0 %v757_v56, %s1886_s27  ;;  %v751_v62 = vsub.f32 0.0, %v750_v61 }
 0x627   : > { %v752_v63 = vmul.f32 1.442695, %v751_v62 }
 0x629   : > { %1824 = vpow2.f32 %v752_v63 }
 0x636   : > { %v1825_v1 = vpop.eup %1824 }
 0x637   : > { %v754_v6 = vadd.f32 1.0, %v1825_v1 }
 0x639   : > { %1826 = vrcp.f32 %v754_v6 }
 0x646   : > { %v1827_v8 = vpop.eup %1826 }
 0x647   : > { %v769_v14 = vsub.f32 1.0, %v1827_v8  ;;  %v775_v16 = vmul.f32 %v1827_v8, %v656_v53 }
 0x697   : > { %v760_v9 = vpop.permute.xlu0 %759 }
 0x698   : > { %v762_v10 = vmul.f32 %v1827_v8, %v760_v9 }
 0x69a   : > { %764 = vrot.lane.b32.xlu1 %v762_v10, %s1886_s27 }
 0x70c   : > { %v765_v11 = vpop.permute.xlu1 %764 }
 0x70d   : > { %v767_v12 = vadd.f32 %v765_v11, %v677_v60 }
 0x70f   : > { %1828 = vtanh.f32 %v767_v12 }
 0x71c   : > { %v1829_v13 = vpop.eup %1828 }
 0x71d   : > { %771 = vrot.lane.b32.xlu0 %v1829_v13, %s1888_s20 }
 0x78f   : > { %v772_v15 = vpop.permute.xlu0 %771 }
 0x790   : > { %v774_v17 = vmul.f32 %v772_v15, %v769_v14 }
 0x792   : > { %v776_v18 = vadd.f32 %v775_v16, %v774_v17 }
 0x794   : > { %778 = vrot.lane.b32.xlu1 %v776_v18, %s1888_s20 }
 0x806   : > { %v779_v19 = vpop.permute.xlu1 %778 }
 0x807   : > { %782 = vst.msk [vmem:[%s781_s14] sm:$0x3] %vm403_vm0, %v779_v19  ;;  %1737 = vmatmul.mubr.msk.f32.vlgmr.msra.gmra.mxu1 %vm424_vm2, %v779_v19  ;;  %s1640_s14 = sshll.u32 %s1874_s15, 1 }
 0x808   : > { %1751 = vmatpush3.msra.mxu1 %v1954_v2  ;;  %1758 = vmatprep.mubr.msk.f32.mxu1 %vm1885_vm1, %v1884_v0  ;;  %s2148_s21 = sadd.s32 %s1640_s14, %s1023_s13 }
 0x809   : > { %1752 = vmatprep.subr.mxu1 %v1884_v0  ;;  %s1641_s22 = sshll.u32 %s2148_s21, 1  ;;  %s1029_s19 = scalar_lea.vmem %s2008_s12, %s2148_s21 }
 0x80a   : > { %1753 = vmatpush3.msra.mxu1 %v1956_v3  ;;  %s1027_s24 = scalar_lea.vmem %s2003_s9, %s1641_s22  ;;  %s1141_s26 = scalar_lea.vmem %s2022_s23, %s1641_s22 }
 0x80b   : > { %1754 = vmatprep.subr.mxu1 %v1884_v0 }
 0x80c   : > { %1755 = vmatpush3.msra.mxu1 %v1962_v4 }
 0x80d   : > { %1756 = vmatprep.subr.mxu1 %v1884_v0 }
 0x80e   : > { %1757 = vmatpush3.msra.mxu1 %v1968_v5 }
 0x80f   : > { %1772 = vmatprep.subr.mxu1 %v1884_v0 }
 0x8c7   : > { %v866_v20 = vpop.f32.mrf.mxu1 }
 0x8c8   : > { %v877_v21 = vadd.f32 %v866_v20, %v1990_v7  ;;  %v870_v26 = vadd.f32 %v866_v20, %v797_v25 }
 0x8c9   : > { %v1738_v22 = vpop.f32.mrf.mxu1 }
 0x8ca   : > { %879 = vrot.lane.b32.xlu0 %v877_v21, %s1886_s27  ;;  %v871_v27 = vsub.f32 0.0, %v870_v26 }
 0x8cc   : > { %v872_v28 = vmul.f32 1.442695, %v871_v27 }
 0x8ce   : > { %1830 = vpow2.f32 %v872_v28 }
 0x8db   : > { %v1831_v29 = vpop.eup %1830 }
 0x8dc   : > { %v874_v30 = vadd.f32 1.0, %v1831_v29 }
 0x8de   : > { %1832 = vrcp.f32 %v874_v30 }
 0x8eb   : > { %v1833_v31 = vpop.eup %1832 }
 0x8ec   : > { %v889_v37 = vsub.f32 1.0, %v1833_v31  ;;  %v895_v39 = vmul.f32 %v1833_v31, %v776_v18 }
 0x93c   : > { %v880_v32 = vpop.permute.xlu0 %879 }
 0x93d   : > { %v882_v33 = vmul.f32 %v1833_v31, %v880_v32 }
 0x93f   : > { %884 = vrot.lane.b32.xlu1 %v882_v33, %s1886_s27 }
 0x9b1   : > { %v885_v34 = vpop.permute.xlu1 %884 }
 0x9b2   : > { %v887_v35 = vadd.f32 %v885_v34, %v797_v25 }
 0x9b4   : > { %1834 = vtanh.f32 %v887_v35 }
 0x9c1   : > { %v1835_v36 = vpop.eup %1834 }
 0x9c2   : > { %891 = vrot.lane.b32.xlu0 %v1835_v36, %s1888_s20 }
 0xa34   : > { %v892_v38 = vpop.permute.xlu0 %891 }
 0xa35   : > { %v894_v40 = vmul.f32 %v892_v38, %v889_v37 }
 0xa37   : > { %v896_v41 = vadd.f32 %v895_v39, %v894_v40 }
 0xa39   : > { %898 = vrot.lane.b32.xlu1 %v896_v41, %s1888_s20 }
 0xaab   : > { %v899_v42 = vpop.permute.xlu1 %898 }
 0xaac   : > { %902 = vst.msk [vmem:[%s901_s29] sm:$0x3] %vm403_vm0, %v899_v42  ;;  %1748 = vmatmul.mubr.msk.f32.vlgmr.msra.gmra.mxu0 %vm424_vm2, %v899_v42  ;;  %s2164_s29 = sadd.s32 %s1874_s15, %s1143_s28 }
 0xaad   : > { %1762 = vmatpush3.msra.mxu0 %v1954_v2  ;;  %1769 = vmatprep.mubr.msk.f32.mxu0 %vm1885_vm1, %v1884_v0  ;;  %s1644_s30 = sshll.u32 %s2164_s29, 1  ;;  %s1148_s6 = scalar_lea.vmem %s2008_s12, %s2164_s29 }
 0xaae   : > { %1763 = vmatprep.subr.mxu0 %v1884_v0  ;;  %s1146_s5 = scalar_lea.vmem %s2003_s9, %s1644_s30  ;;  %v1645_v30 = vld [vmem:[%s1148_s6] ss:$0 sm:$0xff]  ;;  %s1260_s15 = scalar_lea.vmem %s2022_s23, %s1644_s30 }
 0xaaf   : > { %1764 = vmatpush3.msra.mxu0 %v1956_v3  ;;  %v1147_v29 = vld [vmem:[%s1146_s5] sm:$0x3]  ;;  %s1378_s9 = scalar_lea.vmem %s2022_s23, %s1647_s8 }
 0xab0   : > { %1765 = vmatprep.subr.mxu0 %v1884_v0  ;;  %v1156_v31 = vadd.f32 %v1645_v30, %v1147_v29 }
 0xab1   : > { %1766 = vmatpush3.msra.mxu0 %v1962_v4 }
 0xab2   : > { %1767 = vmatprep.subr.mxu0 %v1884_v0 }
 0xab3   : > { %1768 = vmatpush3.msra.mxu0 %v1968_v5 }
 0xb6c   : > { %v986_v43 = vpop.f32.mrf.mxu0 }
 0xb6d   : > { %v997_v44 = vadd.f32 %v986_v43, %v1990_v7  ;;  %v990_v49 = vadd.f32 %v986_v43, %v917_v48 }
 0xb6e   : > { %v1749_v45 = vpop.f32.mrf.mxu0 }
 0xb6f   : > { %999 = vrot.lane.b32.xlu0 %v997_v44, %s1886_s27  ;;  %v991_v50 = vsub.f32 0.0, %v990_v49 }
 0xb71   : > { %v992_v51 = vmul.f32 1.442695, %v991_v50 }
 0xb73   : > { %1836 = vpow2.f32 %v992_v51 }
 0xb80   : > { %v1837_v52 = vpop.eup %1836 }
 0xb81   : > { %v994_v53 = vadd.f32 1.0, %v1837_v52  ;;  %v1265_v52 = vld [vmem:[%s1264_s10] sm:$0x3] }
 0xb83   : > { %1838 = vrcp.f32 %v994_v53 }
 0xb90   : > { %v1839_v54 = vpop.eup %1838 }
 0xb91   : > { %v1009_v60 = vsub.f32 1.0, %v1839_v54  ;;  %v1015_v62 = vmul.f32 %v1839_v54, %v896_v41 }
 0xbe1   : > { %v1000_v55 = vpop.permute.xlu0 %999 }
 0xbe2   : > { %v1002_v56 = vmul.f32 %v1839_v54, %v1000_v55 }
 0xbe4   : > { %1004 = vrot.lane.b32.xlu1 %v1002_v56, %s1886_s27 }
 0xc56   : > { %v1005_v57 = vpop.permute.xlu1 %1004 }
 0xc57   : > { %v1007_v58 = vadd.f32 %v1005_v57, %v917_v48 }
 0xc59   : > { %1840 = vtanh.f32 %v1007_v58 }
 0xc66   : > { %v1841_v59 = vpop.eup %1840 }
 0xc67   : > { %1011 = vrot.lane.b32.xlu0 %v1841_v59, %s1888_s20 }
 0xcd9   : > { %v1012_v61 = vpop.permute.xlu0 %1011 }
 0xcda   : > { %v1014_v63 = vmul.f32 %v1012_v61, %v1009_v60 }
 0xcdc   : > { %v1016_v1 = vadd.f32 %v1015_v62, %v1014_v63 }
 0xcde   : > { %1018 = vrot.lane.b32.xlu1 %v1016_v1, %s1888_s20 }
 0xd50   : > { %v1019_v6 = vpop.permute.xlu1 %1018 }
 0xd51   : > { %1022 = vst.msk [vmem:[%s1021_s11] sm:$0x3] %vm403_vm0, %v1019_v6  ;;  %1759 = vmatmul.mubr.msk.f32.vlgmr.msra.gmra.mxu1 %vm424_vm2, %v1019_v6  ;;  %s1266_s11 = scalar_lea.vmem %s2008_s12, %s1262_s7 }
 0xd52   : > { %1773 = vmatpush3.msra.mxu1 %v1954_v2  ;;  %1780 = vmatprep.mubr.msk.f32.mxu1 %vm1885_vm1, %v1884_v0  ;;  %v1648_v53 = vld [vmem:[%s1266_s11] ss:$0 sm:$0xff] }
 0xd53   : > { %1774 = vmatprep.subr.mxu1 %v1884_v0  ;;  %v1274_v54 = vadd.f32 %v1648_v53, %v1265_v52 }
 0xd54   : > { %1775 = vmatpush3.msra.mxu1 %v1956_v3  ;;  %v1028_v3 = vld [vmem:[%s1027_s24] sm:$0x3] }
 0xd55   : > { %1776 = vmatprep.subr.mxu1 %v1884_v0 }
 0xd56   : > { %1777 = vmatpush3.msra.mxu1 %v1962_v4  ;;  %v1642_v4 = vld [vmem:[%s1029_s19] ss:$0 sm:$0xff] }
 0xd57   : > { %1778 = vmatprep.subr.mxu1 %v1884_v0  ;;  %v1037_v0 = vadd.f32 %v1642_v4, %v1028_v3 }
 0xd58   : > { %1779 = vmatpush3.msra.mxu1 %v1968_v5 }
 0xe11   : > { %v1106_v8 = vpop.f32.mrf.mxu1 }
 0xe12   : > { %v1117_v2 = vadd.f32 %v1106_v8, %v1990_v7  ;;  %v1110_v10 = vadd.f32 %v1106_v8, %v1037_v0 }
 0xe13   : > { %v1760_v9 = vpop.f32.mrf.mxu1 }
 0xe14   : > { %1119 = vrot.lane.b32.xlu0 %v1117_v2, %s1886_s27  ;;  %v1111_v5 = vsub.f32 0.0, %v1110_v10 }
 0xe16   : > { %v1112_v11 = vmul.f32 1.442695, %v1111_v5 }
 0xe18   : > { %1842 = vpow2.f32 %v1112_v11 }
 0xe25   : > { %v1843_v12 = vpop.eup %1842 }
 0xe26   : > { %v1114_v13 = vadd.f32 1.0, %v1843_v12 }
 0xe28   : > { %1844 = vrcp.f32 %v1114_v13 }
 0xe35   : > { %v1845_v14 = vpop.eup %1844 }
 0xe36   : > { %v1129_v20 = vsub.f32 1.0, %v1845_v14  ;;  %v1135_v22 = vmul.f32 %v1845_v14, %v1016_v1 }
 0xe86   : > { %v1120_v15 = vpop.permute.xlu0 %1119 }
 0xe87   : > { %v1122_v16 = vmul.f32 %v1845_v14, %v1120_v15 }
 0xe89   : > { %1124 = vrot.lane.b32.xlu1 %v1122_v16, %s1886_s27 }
 0xefb   : > { %v1125_v17 = vpop.permute.xlu1 %1124 }
 0xefc   : > { %v1127_v18 = vadd.f32 %v1125_v17, %v1037_v0 }
 0xefe   : > { %1846 = vtanh.f32 %v1127_v18 }
 0xf0b   : > { %v1847_v19 = vpop.eup %1846 }
 0xf0c   : > { %1131 = vrot.lane.b32.xlu0 %v1847_v19, %s1888_s20 }
 0xf7e   : > { %v1132_v21 = vpop.permute.xlu0 %1131 }
 0xf7f   : > { %v1134_v23 = vmul.f32 %v1132_v21, %v1129_v20 }
 0xf81   : > { %v1136_v24 = vadd.f32 %v1135_v22, %v1134_v23 }
 0xf83   : > { %1138 = vrot.lane.b32.xlu1 %v1136_v24, %s1888_s20 }
 0xff5   : > { %v1139_v25 = vpop.permute.xlu1 %1138 }
 0xff6   : > { %1142 = vst.msk [vmem:[%s1141_s26] sm:$0x3] %vm403_vm0, %v1139_v25  ;;  %1770 = vmatmul.mubr.msk.f32.vlgmr.msra.gmra.mxu0 %vm424_vm2, %v1139_v25 }
0x10b6   : > { %v1225_v26 = vpop.f32.mrf.mxu0 }
0x10b7   : > { %v1236_v27 = vadd.f32 %v1225_v26, %v1990_v7  ;;  %v1229_v32 = vadd.f32 %v1225_v26, %v1156_v31 }
0x10b8   : > { %v1771_v28 = vpop.f32.mrf.mxu0 }
0x10b9   : > { %1238 = vrot.lane.b32.xlu0 %v1236_v27, %s1886_s27  ;;  %v1230_v33 = vsub.f32 0.0, %v1229_v32 }
0x10bb   : > { %v1231_v34 = vmul.f32 1.442695, %v1230_v33 }
0x10bd   : > { %1848 = vpow2.f32 %v1231_v34 }
0x10ca   : > { %v1849_v35 = vpop.eup %1848 }
0x10cb   : > { %v1233_v36 = vadd.f32 1.0, %v1849_v35 }
0x10cd   : > { %1850 = vrcp.f32 %v1233_v36 }
0x10da   : > { %v1851_v37 = vpop.eup %1850 }
0x10db   : > { %v1248_v43 = vsub.f32 1.0, %v1851_v37  ;;  %v1254_v45 = vmul.f32 %v1851_v37, %v1136_v24 }
0x112b   : > { %v1239_v38 = vpop.permute.xlu0 %1238 }
0x112c   : > { %v1241_v39 = vmul.f32 %v1851_v37, %v1239_v38 }
0x112e   : > { %1243 = vrot.lane.b32.xlu1 %v1241_v39, %s1886_s27 }
0x11a0   : > { %v1244_v40 = vpop.permute.xlu1 %1243 }
0x11a1   : > { %v1246_v41 = vadd.f32 %v1244_v40, %v1156_v31 }
0x11a3   : > { %1852 = vtanh.f32 %v1246_v41 }
0x11b0   : > { %v1853_v42 = vpop.eup %1852 }
0x11b1   : > { %1250 = vrot.lane.b32.xlu0 %v1853_v42, %s1888_s20 }
0x1223   : > { %v1251_v44 = vpop.permute.xlu0 %1250 }
0x1224   : > { %v1253_v46 = vmul.f32 %v1251_v44, %v1248_v43 }
0x1226   : > { %v1255_v47 = vadd.f32 %v1254_v45, %v1253_v46 }
0x1228   : > { %1257 = vrot.lane.b32.xlu1 %v1255_v47, %s1888_s20 }
0x129a   : > { %v1258_v48 = vpop.permute.xlu1 %1257 }
0x129b   : > { %1261 = vst.msk [vmem:[%s1260_s15] sm:$0x3] %vm403_vm0, %v1258_v48  ;;  %1781 = vmatmul.mubr.msk.f32.vlgmr.msra.gmra.mxu1 %vm424_vm2, %v1258_v48 }
0x135b   : > { %v1343_v49 = vpop.f32.mrf.mxu1 }
0x135c   : > { %v1354_v50 = vadd.f32 %v1343_v49, %v1990_v7  ;;  %v1347_v55 = vadd.f32 %v1343_v49, %v1274_v54 }
0x135d   : > { %v1782_v51 = vpop.f32.mrf.mxu1 }
0x135e   : > { %1356 = vrot.lane.b32.xlu0 %v1354_v50, %s1886_s27  ;;  %v1348_v56 = vsub.f32 0.0, %v1347_v55 }
0x1360   : > { %v1349_v57 = vmul.f32 1.442695, %v1348_v56 }
0x1362   : > { %1854 = vpow2.f32 %v1349_v57 }
0x136f   : > { %v1855_v58 = vpop.eup %1854 }
0x1370   : > { %v1351_v59 = vadd.f32 1.0, %v1855_v58 }
0x1372   : > { %1856 = vrcp.f32 %v1351_v59 }
0x137f   : > { %v1857_v60 = vpop.eup %1856 }
0x1380   : > { %v1366_v6 = vsub.f32 1.0, %v1857_v60  ;;  %v1372_v2 = vmul.f32 %v1857_v60, %v1255_v47 }
0x13d0   : > { %v1357_v7 = vpop.permute.xlu0 %1356 }
0x13d1   : > { %v1359_v61 = vmul.f32 %v1857_v60, %v1357_v7 }
0x13d3   : > { %1361 = vrot.lane.b32.xlu1 %v1359_v61, %s1886_s27 }
0x1445   : > { %v1362_v62 = vpop.permute.xlu1 %1361 }
0x1446   : > { %v1364_v63 = vadd.f32 %v1362_v62, %v1274_v54 }
0x1448   : > { %1858 = vtanh.f32 %v1364_v63 }
0x1455   : > { %v1859_v1 = vpop.eup %1858 }
0x1456   : > { %1368 = vrot.lane.b32.xlu0 %v1859_v1, %s1888_s20 }
0x14c8   : > { %v1369_v8 = vpop.permute.xlu0 %1368 }
0x14c9   : > { %v1371_v9 = vmul.f32 %v1369_v8, %v1366_v6 }
0x14cb   : > { %v1373_v3 = vadd.f32 %v1372_v2, %v1371_v9 }
0x14cd   : > { %1375 = vrot.lane.b32.xlu1 %v1373_v3, %s1888_s20 }
0x153f   : > { %v1376_v4 = vpop.permute.xlu1 %1375 }
0x1540   : > { %1379 = vst.msk [vmem:[%s1378_s9] sm:$0x3] %vm403_vm0, %v1376_v4  ;;  %1380 = vst.msk [vmem:[#allocation2] sm:$0x3] %vm403_vm0, %v1376_v4 }
0x1541 PF: > { %s14_s17 = sadd.s32 1, %s1882_s17   ;;  %s2202_s15 = smov %s1878_s16 }
0x1542   : > { %p11_p5 = scmp.ge.s32.totalorder %s14_s17, 4   ;;  %s2203_s16 = smov %s2205_s18 }
0x1544   :  { %13 = sbr.rel (!%p11_p5) target bundleno = 2 (0x2), region = 103 }

</bundles_post_ra>
